<compile_context>
chip_gen: v7x
topology: tpu7x:2x2x1
jax: 0.10.0
libtpu: 0.0.40
codegen_flags: <defaults>
</compile_context>

<pallas_src>
import functools

import jax
import jax.numpy as jnp
from jax.experimental import pallas as pl
from jax.experimental.pallas import tpu as pltpu


def _round_up(x, m):
    return (x + m - 1) // m * m


def _gru_discr_kernel(x_ref, wih_ref, whh_ref, bgi_ref, bhhn_ref, wfc_ref,
                      bfc_ref, out_ref, gi_ref, h_ref, *, tc, bc, hp, unroll):
    """One (batch-chunk, time-chunk) grid step.

    x_ref   : (tc*bc, I)    this chunk's inputs (matmul dtype)
    wih_ref : (I, 3*hp)     input->gate weights, gate slabs lane-aligned
    whh_ref : (hp, 3*hp)    hidden->gate weights
    bgi_ref : (1, 3*hp)     b_ih + [b_hh_r, b_hh_z, 0]   (f32, folded in wrapper)
    bhhn_ref: (1, hp)       b_hh_n (must stay inside r*(...))
    wfc_ref : (hp, O)       Linear head weight^T
    bfc_ref : (1, O)
    out_ref : (bc, O)       written only on the last time chunk
    gi_ref  : (tc*bc, 3*hp) f32 scratch -- hoisted input-side projection
    h_ref   : (bc, hp)      f32 scratch -- hidden state carried across time chunks
    """
    t_chunk = pl.program_id(1)

    @pl.when(t_chunk == 0)
    def _init():
        h_ref[...] = jnp.zeros_like(h_ref)

    # Input-side projection hoisted out of the recurrence: ONE GEMM covers all
    # `tc` timesteps of this chunk; r/z halves of b_hh are pre-folded into bgi.
    gi_ref[...] = (
        jnp.dot(x_ref[...], wih_ref[...], preferred_element_type=jnp.float32)
        + bgi_ref[...]
    )

    whh = whh_ref[...]                       # (hp, 3*hp), matmul dtype
    mm_dtype = whh.dtype
    # Hoisted broadcast (JAX does not CSE broadcast_in_dim inside unrolled loops).
    bhh_n = jnp.broadcast_to(bhhn_ref[...], (bc, hp))

    # TODO(synk): hold whh in MXU weight registers across steps via
    # pltpu.matmul_push_rhs / matmul_acc_lhs to cut per-step MXU latency.
    def step(t, h_prev):
        base = pl.multiple_of(t * bc, 8)              # bc is a multiple of 8
        gi = gi_ref[pl.ds(base, bc), :]               # (bc, 3*hp)
        gh = jnp.dot(h_prev.astype(mm_dtype), whh,
                     preferred_element_type=jnp.float32)   # (bc, 3*hp)
        r = jax.nn.sigmoid(gi[:, 0:hp] + gh[:, 0:hp])
        z = jax.nn.sigmoid(gi[:, hp:2 * hp] + gh[:, hp:2 * hp])
        n = jnp.tanh(gi[:, 2 * hp:3 * hp] + r * (gh[:, 2 * hp:3 * hp] + bhh_n))
        return (1.0 - z) * n + z * h_prev

    h_ref[...] = jax.lax.fori_loop(0, tc, step, h_ref[...], unroll=unroll)

    @pl.when(t_chunk == pl.num_programs(1) - 1)
    def _finalize():
        out_ref[...] = (
            jnp.dot(h_ref[...].astype(mm_dtype), wfc_ref[...],
                    preferred_element_type=jnp.float32) + bfc_ref[...]
        )


def rnn_discr_forward(text, params, *, num_batch_chunks=1, time_chunk=None,
                      matmul_dtype=jnp.float32, unroll=8):
    """text: (seq, batch, input_dim) f32.  Returns (batch, output_dim) f32."""
    S, B, I = text.shape
    assert S >= 1, "empty sequence"
    wih, whh, bih, bhh, wfc, bfc = params
    H = whh.shape[0]
    O = wfc.shape[1]

    # ---- chunking / padding geometry -------------------------------------
    if time_chunk is None:
        time_chunk = S
    assert S % time_chunk == 0, "time_chunk must divide seq_len"
    Tc = time_chunk
    NCt = S // Tc

    NCb = num_batch_chunks                       # 2 shards batch over v7x's 2 TCs
    Bc = _round_up(max(1, -(-B // NCb)), 8)      # per-chunk batch, sublane aligned
    Bp = NCb * Bc

    Hp = _round_up(H, 128)                       # lane-aligned gate slabs

    # ---- pad params to lane-aligned gate slabs (zero fill -> no leakage) ---
    def pad_gate_cols(w):
        rows = w.shape[0]
        out = jnp.zeros((rows, 3 * Hp), jnp.float32)
        for g in range(3):
            out = out.at[:, g * Hp:g * Hp + H].set(w[:, g * H:(g + 1) * H])
        return out

    wih_p = pad_gate_cols(wih)                                       # (I, 3Hp)
    whh_p = jnp.zeros((Hp, 3 * Hp), jnp.float32).at[:H].set(pad_gate_cols(whh))
    bih_p = pad_gate_cols(bih)                                       # (1, 3Hp)
    bhh_p = pad_gate_cols(bhh)                                       # (1, 3Hp)
    wfc_p = jnp.zeros((Hp, O), jnp.float32).at[:H].set(wfc)          # (Hp, O)

    # Fold the r/z halves of b_hh into the GI-GEMM epilogue bias (per-chunk, not
    # per-step); only b_hh_n must stay inside r*(...).
    bgi = bih_p + jnp.concatenate(
        [bhh_p[:, :2 * Hp], jnp.zeros((1, Hp), jnp.float32)], axis=1)
    bhh_n = bhh_p[:, 2 * Hp:]                                        # (1, Hp)

    mm = matmul_dtype
    wih_p, whh_p, wfc_p = wih_p.astype(mm), whh_p.astype(mm), wfc_p.astype(mm)

    # (S, B, I) -> (NCb, NCt, Tc*Bc, I): batch zero-padded to NCb*Bc and made
    # batch-chunk major so every grid step gets one contiguous aligned slab.
    x = jnp.zeros((S, Bp, I), jnp.float32).at[:, :B, :].set(text)
    x = x.reshape(NCt, Tc, NCb, Bc, I).transpose(2, 0, 1, 3, 4)
    x = x.reshape(NCb, NCt, Tc * Bc, I).astype(mm)

    # ---- resident VMEM footprint (per TC) + explicit scoped-VMEM limit -----
    mmb = jnp.dtype(mm).itemsize
    resident = (2 * Tc * Bc * I * mmb            # x chunk (double-buffered)
                + Tc * Bc * 3 * Hp * 4           # hoisted GI scratch
                + Bc * Hp * 4                    # hidden-state carry
                + (I + Hp) * 3 * Hp * mmb        # wih + whh
                + Hp * O * mmb                   # wfc
                + (4 * Hp + O) * 4               # biases
                + 2 * Bc * O * 4)                # out block
    assert resident < (96 << 20), (
        f"resident VMEM {resident >> 20} MiB too large; reduce time_chunk")
    vmem_limit = int(min(128 << 20, max(2 * resident, 32 << 20) + (8 << 20)))

    kernel = functools.partial(_gru_discr_kernel, tc=Tc, bc=Bc, hp=Hp,
                               unroll=int(min(unroll, Tc)))
    const = lambda b, t: (0, 0)

    out = pl.pallas_call(
        kernel,
        out_shape=jax.ShapeDtypeStruct((NCb, Bc, O), jnp.float32),
        grid_spec=pltpu.PrefetchScalarGridSpec(
            num_scalar_prefetch=0,
            grid=(NCb, NCt),
            in_specs=[
                pl.BlockSpec((None, None, Tc * Bc, I), lambda b, t: (b, t, 0, 0)),
                pl.BlockSpec((I, 3 * Hp), const),
                pl.BlockSpec((Hp, 3 * Hp), const),
                pl.BlockSpec((1, 3 * Hp), const),
                pl.BlockSpec((1, Hp), const),
                pl.BlockSpec((Hp, O), const),
                pl.BlockSpec((1, O), const),
            ],
            out_specs=pl.BlockSpec((None, Bc, O), lambda b, t: (b, 0, 0)),
            scratch_shapes=[
                pltpu.VMEM((Tc * Bc, 3 * Hp), jnp.float32),   # hoisted GI chunk
                pltpu.VMEM((Bc, Hp), jnp.float32),            # hidden-state carry
            ]),
        compiler_params=pltpu.CompilerParams(
            dimension_semantics=("parallel", "arbitrary"),
            vmem_limit_bytes=vmem_limit),
    )(x, wih_p, whh_p, bgi, bhh_n, wfc_p, bfc)

    return out.reshape(Bp, O)[:B]


def init_params(key, input_dim, hidden_dim, output_dim):
    """Deterministic synthetic params, PyTorch-style uniform(-1/sqrt(H), 1/sqrt(H)).

    Natural (unpadded) layout, gate-fused and pre-transposed:
      wih: (I, 3H) gate order (r, z, n); whh: (H, 3H); bih/bhh: (1, 3H)
      wfc: (H, O)  Linear weight^T; bfc: (1, O)
    """
    ks = jax.random.split(key, 6)
    bound = 1.0 / jnp.sqrt(jnp.float32(hidden_dim))
    u = lambda k, shape: jax.random.uniform(k, shape, jnp.float32, -bound, bound)
    wih = u(ks[0], (input_dim, 3 * hidden_dim))
    whh = u(ks[1], (hidden_dim, 3 * hidden_dim))
    bih = u(ks[2], (1, 3 * hidden_dim))
    bhh = u(ks[3], (1, 3 * hidden_dim))
    wfc = u(ks[4], (hidden_dim, output_dim))
    bfc = u(ks[5], (1, output_dim))
    return wih, whh, bih, bhh, wfc, bfc


def rnn_discr_reference(text, params):
    """Pure-JAX reference of the GRU + Linear forward (gate order r, z, n)."""
    wih, whh, bih, bhh, wfc, bfc = params
    B = text.shape[1]
    H = whh.shape[0]

    def step(h, x_t):
        gi = x_t @ wih + bih
        gh = h @ whh + bhh
        r = jax.nn.sigmoid(gi[:, 0:H] + gh[:, 0:H])
        z = jax.nn.sigmoid(gi[:, H:2 * H] + gh[:, H:2 * H])
        n = jnp.tanh(gi[:, 2 * H:3 * H] + r * gh[:, 2 * H:3 * H])
        return (1.0 - z) * n + z * h, None

    h0 = jnp.zeros((B, H), jnp.float32)
    h_last, _ = jax.lax.scan(step, h0, text)
    return h_last @ wfc + bfc


if __name__ == "__main__":
    SEQ, BATCH, INPUT_DIM, HIDDEN_DIM, OUTPUT_DIM = 8, 8, 16, 32, 4

    key = jax.random.PRNGKey(0)
    k_x, k_p = jax.random.split(key)
    text = jax.random.normal(k_x, (SEQ, BATCH, INPUT_DIM), jnp.float32)
    params = init_params(k_p, INPUT_DIM, HIDDEN_DIM, OUTPUT_DIM)
    ref = rnn_discr_reference(text, params)

    # f32-matmul path, single batch/time chunk: strict check.
    out = jax.block_until_ready(rnn_discr_forward(text, params))
    assert out.shape == (BATCH, OUTPUT_DIM)
    assert jnp.allclose(out, ref, atol=1e-5, rtol=1e-5), "f32 path mismatch"

    # bf16-matmul + batch-sharded + time-chunked path (v6e/v7x config): loose check.
    out_bf16 = jax.block_until_ready(
        rnn_discr_forward(text, params, num_batch_chunks=2, time_chunk=4,
                          matmul_dtype=jnp.bfloat16))
    assert out_bf16.shape == (BATCH, OUTPUT_DIM)
    assert jnp.allclose(out_bf16, ref, atol=5e-2, rtol=5e-2), "bf16 path mismatch"

    print("KERNEL_OK")
</pallas_src>

<mosaic_0001>
module attributes {stable_mosaic.version = 11 : i64} {
  func.func @_gru_discr_kernel(%arg0: i32, %arg1: i32, %arg2: memref<1x1x64x16xf32, #tpu.memory_space<vmem>>, %arg3: memref<16x384xf32, #tpu.memory_space<vmem>>, %arg4: memref<128x384xf32, #tpu.memory_space<vmem>>, %arg5: memref<1x384xf32, #tpu.memory_space<vmem>>, %arg6: memref<1x128xf32, #tpu.memory_space<vmem>>, %arg7: memref<128x4xf32, #tpu.memory_space<vmem>>, %arg8: memref<1x4xf32, #tpu.memory_space<vmem>>, %arg9: memref<1x8x4xf32, #tpu.memory_space<vmem>>, %arg10: memref<64x384xf32, #tpu.memory_space<vmem>>, %arg11: memref<8x128xf32, #tpu.memory_space<vmem>>) attributes {dimension_semantics = [#tpu.dimension_semantics<parallel>, #tpu.dimension_semantics<arbitrary>], iteration_bounds = array<i64: 1, 1>, scalar_prefetch = 0 : i64, scratch_operands = 2 : i64, tpu.core_type = #tpu.core_type<tc>, window_params = [{transform_indices = @transform_0, window_bounds = array<i64: 1, 1, 64, 16>}, {pipeline_mode = #tpu.pipeline_mode<synchronous>, transform_indices = @transform_1, window_bounds = array<i64: 16, 384>}, {pipeline_mode = #tpu.pipeline_mode<synchronous>, transform_indices = @transform_2, window_bounds = array<i64: 128, 384>}, {pipeline_mode = #tpu.pipeline_mode<synchronous>, transform_indices = @transform_3, window_bounds = array<i64: 1, 384>}, {pipeline_mode = #tpu.pipeline_mode<synchronous>, transform_indices = @transform_4, window_bounds = array<i64: 1, 128>}, {pipeline_mode = #tpu.pipeline_mode<synchronous>, transform_indices = @transform_5, window_bounds = array<i64: 128, 4>}, {pipeline_mode = #tpu.pipeline_mode<synchronous>, transform_indices = @transform_6, window_bounds = array<i64: 1, 4>}, {transform_indices = @transform_7, window_bounds = array<i64: 1, 8, 4>}]} {
    %c0_i32 = arith.constant 0 : i32
    %0 = arith.cmpi eq, %arg1, %c0_i32 : i32
    %1 = arith.extui %0 : i1 to i32
    %c0_i32_0 = arith.constant 0 : i32
    %2 = arith.cmpi ne, %1, %c0_i32_0 : i32
    scf.if %2 {
      %cst_69 = arith.constant 0.000000e+00 : f32
      %276 = vector.broadcast %cst_69 : f32 to vector<8x128xf32>
      %c0_70 = arith.constant 0 : index
      %c0_71 = arith.constant 0 : index
      %277 = vector.load %arg11[%c0_70, %c0_71] : memref<8x128xf32, #tpu.memory_space<vmem>>, vector<8x128xf32>
      tpu.vector_store %arg11[%c0_70, %c0_71], %276 {strides = array<i32>} : memref<8x128xf32, #tpu.memory_space<vmem>>, vector<8x128xf32>,
    } else {
    }
    %c0 = arith.constant 0 : index
    %c0_1 = arith.constant 0 : index
    %c0_2 = arith.constant 0 : index
    %c0_3 = arith.constant 0 : index
    %3 = vector.load %arg2[%c0, %c0_1, %c0_2, %c0_3] : memref<1x1x64x16xf32, #tpu.memory_space<vmem>>, vector<1x1x64x16xf32>
    %4 = vector.shape_cast %3 : vector<1x1x64x16xf32> to vector<64x16xf32>
    %c0_4 = arith.constant 0 : index
    %c0_5 = arith.constant 0 : index
    %5 = vector.load %arg3[%c0_4, %c0_5] : memref<16x384xf32, #tpu.memory_space<vmem>>, vector<16x384xf32>
    %cst = arith.constant dense<0.000000e+00> : vector<64x384xf32>
    %6 = tpu.matmul %4, %5, %cst {dimension_numbers = #tpu.dot_dimension_numbers<[1], [0], [0], [1], [0, 0, 1, 1], [], []>} : vector<64x16xf32>, vector<16x384xf32>, vector<64x384xf32> -> vector<64x384xf32>
    %c0_6 = arith.constant 0 : index
    %c0_7 = arith.constant 0 : index
    %7 = vector.load %arg5[%c0_6, %c0_7] : memref<1x384xf32, #tpu.memory_space<vmem>>, vector<1x384xf32>
    %8 = vector.broadcast %7 : vector<1x384xf32> to vector<64x384xf32>
    %9 = arith.addf %6, %8 : vector<64x384xf32>
    %c0_8 = arith.constant 0 : index
    %c0_9 = arith.constant 0 : index
    %10 = vector.load %arg10[%c0_8, %c0_9] : memref<64x384xf32, #tpu.memory_space<vmem>>, vector<64x384xf32>
    tpu.vector_store %arg10[%c0_8, %c0_9], %9 {strides = array<i32>} : memref<64x384xf32, #tpu.memory_space<vmem>>, vector<64x384xf32>,
    %c0_10 = arith.constant 0 : index
    %c0_11 = arith.constant 0 : index
    %11 = vector.load %arg4[%c0_10, %c0_11] : memref<128x384xf32, #tpu.memory_space<vmem>>, vector<128x384xf32>
    %c0_12 = arith.constant 0 : index
    %c0_13 = arith.constant 0 : index
    %12 = vector.load %arg6[%c0_12, %c0_13] : memref<1x128xf32, #tpu.memory_space<vmem>>, vector<1x128xf32>
    %13 = vector.shape_cast %12 : vector<1x128xf32> to vector<1x128xf32>
    %14 = vector.broadcast %13 : vector<1x128xf32> to vector<8x128xf32>
    %c0_14 = arith.constant 0 : index
    %c0_15 = arith.constant 0 : index
    %15 = vector.load %arg11[%c0_14, %c0_15] : memref<8x128xf32, #tpu.memory_space<vmem>>, vector<8x128xf32>
    %c0_i32_16 = arith.constant 0 : i32
    %c8_i32 = arith.constant 8 : i32
    %16 = arith.muli %c0_i32_16, %c8_i32 : i32
    %17 = tpu.assume_multiple %16, 8 : i32
    %18 = arith.index_cast %17 : i32 to index
    %c0_17 = arith.constant 0 : index
    %19 = vector.load %arg10[%18, %c0_17] : memref<64x384xf32, #tpu.memory_space<vmem>>, vector<8x384xf32>
    %cst_18 = arith.constant dense<0.000000e+00> : vector<8x384xf32>
    %20 = tpu.matmul %15, %11, %cst_18 {dimension_numbers = #tpu.dot_dimension_numbers<[1], [0], [0], [1], [0, 0, 1, 1], [], []>} : vector<8x128xf32>, vector<128x384xf32>, vector<8x384xf32> -> vector<8x384xf32>
    %21 = vector.extract_strided_slice %19 {offsets = [0, 0], sizes = [8, 128], strides = [1, 1]} : vector<8x384xf32> to vector<8x128xf32>
    %22 = vector.extract_strided_slice %20 {offsets = [0, 0], sizes = [8, 128], strides = [1, 1]} : vector<8x384xf32> to vector<8x128xf32>
    %23 = arith.addf %21, %22 : vector<8x128xf32>
    %24 = arith.negf %23 : vector<8x128xf32>
    %25 = math.exp %24 : vector<8x128xf32>
    %cst_19 = arith.constant 1.000000e+00 : f32
    %26 = vector.broadcast %cst_19 : f32 to vector<8x128xf32>
    %27 = arith.addf %26, %25 : vector<8x128xf32>
    %28 = arith.divf %26, %27 : vector<8x128xf32>
    %29 = vector.extract_strided_slice %19 {offsets = [0, 128], sizes = [8, 128], strides = [1, 1]} : vector<8x384xf32> to vector<8x128xf32>
    %30 = vector.extract_strided_slice %20 {offsets = [0, 128], sizes = [8, 128], strides = [1, 1]} : vector<8x384xf32> to vector<8x128xf32>
    %31 = arith.addf %29, %30 : vector<8x128xf32>
    %32 = arith.negf %31 : vector<8x128xf32>
    %33 = math.exp %32 : vector<8x128xf32>
    %cst_20 = arith.constant 1.000000e+00 : f32
    %34 = vector.broadcast %cst_20 : f32 to vector<8x128xf32>
    %35 = arith.addf %34, %33 : vector<8x128xf32>
    %36 = arith.divf %34, %35 : vector<8x128xf32>
    %37 = vector.extract_strided_slice %19 {offsets = [0, 256], sizes = [8, 128], strides = [1, 1]} : vector<8x384xf32> to vector<8x128xf32>
    %38 = vector.extract_strided_slice %20 {offsets = [0, 256], sizes = [8, 128], strides = [1, 1]} : vector<8x384xf32> to vector<8x128xf32>
    %39 = arith.addf %38, %14 : vector<8x128xf32>
    %40 = arith.mulf %28, %39 : vector<8x128xf32>
    %41 = arith.addf %37, %40 : vector<8x128xf32>
    %42 = math.tanh %41 : vector<8x128xf32>
    %cst_21 = arith.constant 1.000000e+00 : f32
    %43 = vector.broadcast %cst_21 : f32 to vector<8x128xf32>
    %44 = arith.subf %43, %36 : vector<8x128xf32>
    %45 = arith.mulf %44, %42 : vector<8x128xf32>
    %46 = arith.mulf %36, %15 : vector<8x128xf32>
    %47 = arith.addf %45, %46 : vector<8x128xf32>
    %c1_i32 = arith.constant 1 : i32
    %c8_i32_22 = arith.constant 8 : i32
    %48 = arith.muli %c1_i32, %c8_i32_22 : i32
    %49 = tpu.assume_multiple %48, 8 : i32
    %50 = arith.index_cast %49 : i32 to index
    %c0_23 = arith.constant 0 : index
    %51 = vector.load %arg10[%50, %c0_23] : memref<64x384xf32, #tpu.memory_space<vmem>>, vector<8x384xf32>
    %cst_24 = arith.constant dense<0.000000e+00> : vector<8x384xf32>
    %52 = tpu.matmul %47, %11, %cst_24 {dimension_numbers = #tpu.dot_dimension_numbers<[1], [0], [0], [1], [0, 0, 1, 1], [], []>} : vector<8x128xf32>, vector<128x384xf32>, vector<8x384xf32> -> vector<8x384xf32>
    %53 = vector.extract_strided_slice %51 {offsets = [0, 0], sizes = [8, 128], strides = [1, 1]} : vector<8x384xf32> to vector<8x128xf32>
    %54 = vector.extract_strided_slice %52 {offsets = [0, 0], sizes = [8, 128], strides = [1, 1]} : vector<8x384xf32> to vector<8x128xf32>
    %55 = arith.addf %53, %54 : vector<8x128xf32>
    %56 = arith.negf %55 : vector<8x128xf32>
    %57 = math.exp %56 : vector<8x128xf32>
    %cst_25 = arith.constant 1.000000e+00 : f32
    %58 = vector.broadcast %cst_25 : f32 to vector<8x128xf32>
    %59 = arith.addf %58, %57 : vector<8x128xf32>
    %60 = arith.divf %58, %59 : vector<8x128xf32>
    %61 = vector.extract_strided_slice %51 {offsets = [0, 128], sizes = [8, 128], strides = [1, 1]} : vector<8x384xf32> to vector<8x128xf32>
    %62 = vector.extract_strided_slice %52 {offsets = [0, 128], sizes = [8, 128], strides = [1, 1]} : vector<8x384xf32> to vector<8x128xf32>
    %63 = arith.addf %61, %62 : vector<8x128xf32>
    %64 = arith.negf %63 : vector<8x128xf32>
    %65 = math.exp %64 : vector<8x128xf32>
    %cst_26 = arith.constant 1.000000e+00 : f32
    %66 = vector.broadcast %cst_26 : f32 to vector<8x128xf32>
    %67 = arith.addf %66, %65 : vector<8x128xf32>
    %68 = arith.divf %66, %67 : vector<8x128xf32>
    %69 = vector.extract_strided_slice %51 {offsets = [0, 256], sizes = [8, 128], strides = [1, 1]} : vector<8x384xf32> to vector<8x128xf32>
    %70 = vector.extract_strided_slice %52 {offsets = [0, 256], sizes = [8, 128], strides = [1, 1]} : vector<8x384xf32> to vector<8x128xf32>
    %71 = arith.addf %70, %14 : vector<8x128xf32>
    %72 = arith.mulf %60, %71 : vector<8x128xf32>
    %73 = arith.addf %69, %72 : vector<8x128xf32>
    %74 = math.tanh %73 : vector<8x128xf32>
    %cst_27 = arith.constant 1.000000e+00 : f32
    %75 = vector.broadcast %cst_27 : f32 to vector<8x128xf32>
    %76 = arith.subf %75, %68 : vector<8x128xf32>
    %77 = arith.mulf %76, %74 : vector<8x128xf32>
    %78 = arith.mulf %68, %47 : vector<8x128xf32>
    %79 = arith.addf %77, %78 : vector<8x128xf32>
    %c2_i32 = arith.constant 2 : i32
    %c8_i32_28 = arith.constant 8 : i32
    %80 = arith.muli %c2_i32, %c8_i32_28 : i32
    %81 = tpu.assume_multiple %80, 8 : i32
    %82 = arith.index_cast %81 : i32 to index
    %c0_29 = arith.constant 0 : index
    %83 = vector.load %arg10[%82, %c0_29] : memref<64x384xf32, #tpu.memory_space<vmem>>, vector<8x384xf32>
    %cst_30 = arith.constant dense<0.000000e+00> : vector<8x384xf32>
    %84 = tpu.matmul %79, %11, %cst_30 {dimension_numbers = #tpu.dot_dimension_numbers<[1], [0], [0], [1], [0, 0, 1, 1], [], []>} : vector<8x128xf32>, vector<128x384xf32>, vector<8x384xf32> -> vector<8x384xf32>
    %85 = vector.extract_strided_slice %83 {offsets = [0, 0], sizes = [8, 128], strides = [1, 1]} : vector<8x384xf32> to vector<8x128xf32>
    %86 = vector.extract_strided_slice %84 {offsets = [0, 0], sizes = [8, 128], strides = [1, 1]} : vector<8x384xf32> to vector<8x128xf32>
    %87 = arith.addf %85, %86 : vector<8x128xf32>
    %88 = arith.negf %87 : vector<8x128xf32>
    %89 = math.exp %88 : vector<8x128xf32>
    %cst_31 = arith.constant 1.000000e+00 : f32
    %90 = vector.broadcast %cst_31 : f32 to vector<8x128xf32>
    %91 = arith.addf %90, %89 : vector<8x128xf32>
    %92 = arith.divf %90, %91 : vector<8x128xf32>
    %93 = vector.extract_strided_slice %83 {offsets = [0, 128], sizes = [8, 128], strides = [1, 1]} : vector<8x384xf32> to vector<8x128xf32>
    %94 = vector.extract_strided_slice %84 {offsets = [0, 128], sizes = [8, 128], strides = [1, 1]} : vector<8x384xf32> to vector<8x128xf32>
    %95 = arith.addf %93, %94 : vector<8x128xf32>
    %96 = arith.negf %95 : vector<8x128xf32>
    %97 = math.exp %96 : vector<8x128xf32>
    %cst_32 = arith.constant 1.000000e+00 : f32
    %98 = vector.broadcast %cst_32 : f32 to vector<8x128xf32>
    %99 = arith.addf %98, %97 : vector<8x128xf32>
    %100 = arith.divf %98, %99 : vector<8x128xf32>
    %101 = vector.extract_strided_slice %83 {offsets = [0, 256], sizes = [8, 128], strides = [1, 1]} : vector<8x384xf32> to vector<8x128xf32>
    %102 = vector.extract_strided_slice %84 {offsets = [0, 256], sizes = [8, 128], strides = [1, 1]} : vector<8x384xf32> to vector<8x128xf32>
    %103 = arith.addf %102, %14 : vector<8x128xf32>
    %104 = arith.mulf %92, %103 : vector<8x128xf32>
    %105 = arith.addf %101, %104 : vector<8x128xf32>
    %106 = math.tanh %105 : vector<8x128xf32>
    %cst_33 = arith.constant 1.000000e+00 : f32
    %107 = vector.broadcast %cst_33 : f32 to vector<8x128xf32>
    %108 = arith.subf %107, %100 : vector<8x128xf32>
    %109 = arith.mulf %108, %106 : vector<8x128xf32>
    %110 = arith.mulf %100, %79 : vector<8x128xf32>
    %111 = arith.addf %109, %110 : vector<8x128xf32>
    %c3_i32 = arith.constant 3 : i32
    %c8_i32_34 = arith.constant 8 : i32
    %112 = arith.muli %c3_i32, %c8_i32_34 : i32
    %113 = tpu.assume_multiple %112, 8 : i32
    %114 = arith.index_cast %113 : i32 to index
    %c0_35 = arith.constant 0 : index
    %115 = vector.load %arg10[%114, %c0_35] : memref<64x384xf32, #tpu.memory_space<vmem>>, vector<8x384xf32>
    %cst_36 = arith.constant dense<0.000000e+00> : vector<8x384xf32>
    %116 = tpu.matmul %111, %11, %cst_36 {dimension_numbers = #tpu.dot_dimension_numbers<[1], [0], [0], [1], [0, 0, 1, 1], [], []>} : vector<8x128xf32>, vector<128x384xf32>, vector<8x384xf32> -> vector<8x384xf32>
    %117 = vector.extract_strided_slice %115 {offsets = [0, 0], sizes = [8, 128], strides = [1, 1]} : vector<8x384xf32> to vector<8x128xf32>
    %118 = vector.extract_strided_slice %116 {offsets = [0, 0], sizes = [8, 128], strides = [1, 1]} : vector<8x384xf32> to vector<8x128xf32>
    %119 = arith.addf %117, %118 : vector<8x128xf32>
    %120 = arith.negf %119 : vector<8x128xf32>
    %121 = math.exp %120 : vector<8x128xf32>
    %cst_37 = arith.constant 1.000000e+00 : f32
    %122 = vector.broadcast %cst_37 : f32 to vector<8x128xf32>
    %123 = arith.addf %122, %121 : vector<8x128xf32>
    %124 = arith.divf %122, %123 : vector<8x128xf32>
    %125 = vector.extract_strided_slice %115 {offsets = [0, 128], sizes = [8, 128], strides = [1, 1]} : vector<8x384xf32> to vector<8x128xf32>
    %126 = vector.extract_strided_slice %116 {offsets = [0, 128], sizes = [8, 128], strides = [1, 1]} : vector<8x384xf32> to vector<8x128xf32>
    %127 = arith.addf %125, %126 : vector<8x128xf32>
    %128 = arith.negf %127 : vector<8x128xf32>
    %129 = math.exp %128 : vector<8x128xf32>
    %cst_38 = arith.constant 1.000000e+00 : f32
    %130 = vector.broadcast %cst_38 : f32 to vector<8x128xf32>
    %131 = arith.addf %130, %129 : vector<8x128xf32>
    %132 = arith.divf %130, %131 : vector<8x128xf32>
    %133 = vector.extract_strided_slice %115 {offsets = [0, 256], sizes = [8, 128], strides = [1, 1]} : vector<8x384xf32> to vector<8x128xf32>
    %134 = vector.extract_strided_slice %116 {offsets = [0, 256], sizes = [8, 128], strides = [1, 1]} : vector<8x384xf32> to vector<8x128xf32>
    %135 = arith.addf %134, %14 : vector<8x128xf32>
    %136 = arith.mulf %124, %135 : vector<8x128xf32>
    %137 = arith.addf %133, %136 : vector<8x128xf32>
    %138 = math.tanh %137 : vector<8x128xf32>
    %cst_39 = arith.constant 1.000000e+00 : f32
    %139 = vector.broadcast %cst_39 : f32 to vector<8x128xf32>
    %140 = arith.subf %139, %132 : vector<8x128xf32>
    %141 = arith.mulf %140, %138 : vector<8x128xf32>
    %142 = arith.mulf %132, %111 : vector<8x128xf32>
    %143 = arith.addf %141, %142 : vector<8x128xf32>
    %c4_i32 = arith.constant 4 : i32
    %c8_i32_40 = arith.constant 8 : i32
    %144 = arith.muli %c4_i32, %c8_i32_40 : i32
    %145 = tpu.assume_multiple %144, 8 : i32
    %146 = arith.index_cast %145 : i32 to index
    %c0_41 = arith.constant 0 : index
    %147 = vector.load %arg10[%146, %c0_41] : memref<64x384xf32, #tpu.memory_space<vmem>>, vector<8x384xf32>
    %cst_42 = arith.constant dense<0.000000e+00> : vector<8x384xf32>
    %148 = tpu.matmul %143, %11, %cst_42 {dimension_numbers = #tpu.dot_dimension_numbers<[1], [0], [0], [1], [0, 0, 1, 1], [], []>} : vector<8x128xf32>, vector<128x384xf32>, vector<8x384xf32> -> vector<8x384xf32>
    %149 = vector.extract_strided_slice %147 {offsets = [0, 0], sizes = [8, 128], strides = [1, 1]} : vector<8x384xf32> to vector<8x128xf32>
    %150 = vector.extract_strided_slice %148 {offsets = [0, 0], sizes = [8, 128], strides = [1, 1]} : vector<8x384xf32> to vector<8x128xf32>
    %151 = arith.addf %149, %150 : vector<8x128xf32>
    %152 = arith.negf %151 : vector<8x128xf32>
    %153 = math.exp %152 : vector<8x128xf32>
    %cst_43 = arith.constant 1.000000e+00 : f32
    %154 = vector.broadcast %cst_43 : f32 to vector<8x128xf32>
    %155 = arith.addf %154, %153 : vector<8x128xf32>
    %156 = arith.divf %154, %155 : vector<8x128xf32>
    %157 = vector.extract_strided_slice %147 {offsets = [0, 128], sizes = [8, 128], strides = [1, 1]} : vector<8x384xf32> to vector<8x128xf32>
    %158 = vector.extract_strided_slice %148 {offsets = [0, 128], sizes = [8, 128], strides = [1, 1]} : vector<8x384xf32> to vector<8x128xf32>
    %159 = arith.addf %157, %158 : vector<8x128xf32>
    %160 = arith.negf %159 : vector<8x128xf32>
    %161 = math.exp %160 : vector<8x128xf32>
    %cst_44 = arith.constant 1.000000e+00 : f32
    %162 = vector.broadcast %cst_44 : f32 to vector<8x128xf32>
    %163 = arith.addf %162, %161 : vector<8x128xf32>
    %164 = arith.divf %162, %163 : vector<8x128xf32>
    %165 = vector.extract_strided_slice %147 {offsets = [0, 256], sizes = [8, 128], strides = [1, 1]} : vector<8x384xf32> to vector<8x128xf32>
    %166 = vector.extract_strided_slice %148 {offsets = [0, 256], sizes = [8, 128], strides = [1, 1]} : vector<8x384xf32> to vector<8x128xf32>
    %167 = arith.addf %166, %14 : vector<8x128xf32>
    %168 = arith.mulf %156, %167 : vector<8x128xf32>
    %169 = arith.addf %165, %168 : vector<8x128xf32>
    %170 = math.tanh %169 : vector<8x128xf32>
    %cst_45 = arith.constant 1.000000e+00 : f32
    %171 = vector.broadcast %cst_45 : f32 to vector<8x128xf32>
    %172 = arith.subf %171, %164 : vector<8x128xf32>
    %173 = arith.mulf %172, %170 : vector<8x128xf32>
    %174 = arith.mulf %164, %143 : vector<8x128xf32>
    %175 = arith.addf %173, %174 : vector<8x128xf32>
    %c5_i32 = arith.constant 5 : i32
    %c8_i32_46 = arith.constant 8 : i32
    %176 = arith.muli %c5_i32, %c8_i32_46 : i32
    %177 = tpu.assume_multiple %176, 8 : i32
    %178 = arith.index_cast %177 : i32 to index
    %c0_47 = arith.constant 0 : index
    %179 = vector.load %arg10[%178, %c0_47] : memref<64x384xf32, #tpu.memory_space<vmem>>, vector<8x384xf32>
    %cst_48 = arith.constant dense<0.000000e+00> : vector<8x384xf32>
    %180 = tpu.matmul %175, %11, %cst_48 {dimension_numbers = #tpu.dot_dimension_numbers<[1], [0], [0], [1], [0, 0, 1, 1], [], []>} : vector<8x128xf32>, vector<128x384xf32>, vector<8x384xf32> -> vector<8x384xf32>
    %181 = vector.extract_strided_slice %179 {offsets = [0, 0], sizes = [8, 128], strides = [1, 1]} : vector<8x384xf32> to vector<8x128xf32>
    %182 = vector.extract_strided_slice %180 {offsets = [0, 0], sizes = [8, 128], strides = [1, 1]} : vector<8x384xf32> to vector<8x128xf32>
    %183 = arith.addf %181, %182 : vector<8x128xf32>
    %184 = arith.negf %183 : vector<8x128xf32>
    %185 = math.exp %184 : vector<8x128xf32>
    %cst_49 = arith.constant 1.000000e+00 : f32
    %186 = vector.broadcast %cst_49 : f32 to vector<8x128xf32>
    %187 = arith.addf %186, %185 : vector<8x128xf32>
    %188 = arith.divf %186, %187 : vector<8x128xf32>
    %189 = vector.extract_strided_slice %179 {offsets = [0, 128], sizes = [8, 128], strides = [1, 1]} : vector<8x384xf32> to vector<8x128xf32>
    %190 = vector.extract_strided_slice %180 {offsets = [0, 128], sizes = [8, 128], strides = [1, 1]} : vector<8x384xf32> to vector<8x128xf32>
    %191 = arith.addf %189, %190 : vector<8x128xf32>
    %192 = arith.negf %191 : vector<8x128xf32>
    %193 = math.exp %192 : vector<8x128xf32>
    %cst_50 = arith.constant 1.000000e+00 : f32
    %194 = vector.broadcast %cst_50 : f32 to vector<8x128xf32>
    %195 = arith.addf %194, %193 : vector<8x128xf32>
    %196 = arith.divf %194, %195 : vector<8x128xf32>
    %197 = vector.extract_strided_slice %179 {offsets = [0, 256], sizes = [8, 128], strides = [1, 1]} : vector<8x384xf32> to vector<8x128xf32>
    %198 = vector.extract_strided_slice %180 {offsets = [0, 256], sizes = [8, 128], strides = [1, 1]} : vector<8x384xf32> to vector<8x128xf32>
    %199 = arith.addf %198, %14 : vector<8x128xf32>
    %200 = arith.mulf %188, %199 : vector<8x128xf32>
    %201 = arith.addf %197, %200 : vector<8x128xf32>
    %202 = math.tanh %201 : vector<8x128xf32>
    %cst_51 = arith.constant 1.000000e+00 : f32
    %203 = vector.broadcast %cst_51 : f32 to vector<8x128xf32>
    %204 = arith.subf %203, %196 : vector<8x128xf32>
    %205 = arith.mulf %204, %202 : vector<8x128xf32>
    %206 = arith.mulf %196, %175 : vector<8x128xf32>
    %207 = arith.addf %205, %206 : vector<8x128xf32>
    %c6_i32 = arith.constant 6 : i32
    %c8_i32_52 = arith.constant 8 : i32
    %208 = arith.muli %c6_i32, %c8_i32_52 : i32
    %209 = tpu.assume_multiple %208, 8 : i32
    %210 = arith.index_cast %209 : i32 to index
    %c0_53 = arith.constant 0 : index
    %211 = vector.load %arg10[%210, %c0_53] : memref<64x384xf32, #tpu.memory_space<vmem>>, vector<8x384xf32>
    %cst_54 = arith.constant dense<0.000000e+00> : vector<8x384xf32>
    %212 = tpu.matmul %207, %11, %cst_54 {dimension_numbers = #tpu.dot_dimension_numbers<[1], [0], [0], [1], [0, 0, 1, 1], [], []>} : vector<8x128xf32>, vector<128x384xf32>, vector<8x384xf32> -> vector<8x384xf32>
    %213 = vector.extract_strided_slice %211 {offsets = [0, 0], sizes = [8, 128], strides = [1, 1]} : vector<8x384xf32> to vector<8x128xf32>
    %214 = vector.extract_strided_slice %212 {offsets = [0, 0], sizes = [8, 128], strides = [1, 1]} : vector<8x384xf32> to vector<8x128xf32>
    %215 = arith.addf %213, %214 : vector<8x128xf32>
    %216 = arith.negf %215 : vector<8x128xf32>
    %217 = math.exp %216 : vector<8x128xf32>
    %cst_55 = arith.constant 1.000000e+00 : f32
    %218 = vector.broadcast %cst_55 : f32 to vector<8x128xf32>
    %219 = arith.addf %218, %217 : vector<8x128xf32>
    %220 = arith.divf %218, %219 : vector<8x128xf32>
    %221 = vector.extract_strided_slice %211 {offsets = [0, 128], sizes = [8, 128], strides = [1, 1]} : vector<8x384xf32> to vector<8x128xf32>
    %222 = vector.extract_strided_slice %212 {offsets = [0, 128], sizes = [8, 128], strides = [1, 1]} : vector<8x384xf32> to vector<8x128xf32>
    %223 = arith.addf %221, %222 : vector<8x128xf32>
    %224 = arith.negf %223 : vector<8x128xf32>
    %225 = math.exp %224 : vector<8x128xf32>
    %cst_56 = arith.constant 1.000000e+00 : f32
    %226 = vector.broadcast %cst_56 : f32 to vector<8x128xf32>
    %227 = arith.addf %226, %225 : vector<8x128xf32>
    %228 = arith.divf %226, %227 : vector<8x128xf32>
    %229 = vector.extract_strided_slice %211 {offsets = [0, 256], sizes = [8, 128], strides = [1, 1]} : vector<8x384xf32> to vector<8x128xf32>
    %230 = vector.extract_strided_slice %212 {offsets = [0, 256], sizes = [8, 128], strides = [1, 1]} : vector<8x384xf32> to vector<8x128xf32>
    %231 = arith.addf %230, %14 : vector<8x128xf32>
    %232 = arith.mulf %220, %231 : vector<8x128xf32>
    %233 = arith.addf %229, %232 : vector<8x128xf32>
    %234 = math.tanh %233 : vector<8x128xf32>
    %cst_57 = arith.constant 1.000000e+00 : f32
    %235 = vector.broadcast %cst_57 : f32 to vector<8x128xf32>
    %236 = arith.subf %235, %228 : vector<8x128xf32>
    %237 = arith.mulf %236, %234 : vector<8x128xf32>
    %238 = arith.mulf %228, %207 : vector<8x128xf32>
    %239 = arith.addf %237, %238 : vector<8x128xf32>
    %c7_i32 = arith.constant 7 : i32
    %c8_i32_58 = arith.constant 8 : i32
    %240 = arith.muli %c7_i32, %c8_i32_58 : i32
    %241 = tpu.assume_multiple %240, 8 : i32
    %242 = arith.index_cast %241 : i32 to index
    %c0_59 = arith.constant 0 : index
    %243 = vector.load %arg10[%242, %c0_59] : memref<64x384xf32, #tpu.memory_space<vmem>>, vector<8x384xf32>
    %cst_60 = arith.constant dense<0.000000e+00> : vector<8x384xf32>
    %244 = tpu.matmul %239, %11, %cst_60 {dimension_numbers = #tpu.dot_dimension_numbers<[1], [0], [0], [1], [0, 0, 1, 1], [], []>} : vector<8x128xf32>, vector<128x384xf32>, vector<8x384xf32> -> vector<8x384xf32>
    %245 = vector.extract_strided_slice %243 {offsets = [0, 0], sizes = [8, 128], strides = [1, 1]} : vector<8x384xf32> to vector<8x128xf32>
    %246 = vector.extract_strided_slice %244 {offsets = [0, 0], sizes = [8, 128], strides = [1, 1]} : vector<8x384xf32> to vector<8x128xf32>
    %247 = arith.addf %245, %246 : vector<8x128xf32>
    %248 = arith.negf %247 : vector<8x128xf32>
    %249 = math.exp %248 : vector<8x128xf32>
    %cst_61 = arith.constant 1.000000e+00 : f32
    %250 = vector.broadcast %cst_61 : f32 to vector<8x128xf32>
    %251 = arith.addf %250, %249 : vector<8x128xf32>
    %252 = arith.divf %250, %251 : vector<8x128xf32>
    %253 = vector.extract_strided_slice %243 {offsets = [0, 128], sizes = [8, 128], strides = [1, 1]} : vector<8x384xf32> to vector<8x128xf32>
    %254 = vector.extract_strided_slice %244 {offsets = [0, 128], sizes = [8, 128], strides = [1, 1]} : vector<8x384xf32> to vector<8x128xf32>
    %255 = arith.addf %253, %254 : vector<8x128xf32>
    %256 = arith.negf %255 : vector<8x128xf32>
    %257 = math.exp %256 : vector<8x128xf32>
    %cst_62 = arith.constant 1.000000e+00 : f32
    %258 = vector.broadcast %cst_62 : f32 to vector<8x128xf32>
    %259 = arith.addf %258, %257 : vector<8x128xf32>
    %260 = arith.divf %258, %259 : vector<8x128xf32>
    %261 = vector.extract_strided_slice %243 {offsets = [0, 256], sizes = [8, 128], strides = [1, 1]} : vector<8x384xf32> to vector<8x128xf32>
    %262 = vector.extract_strided_slice %244 {offsets = [0, 256], sizes = [8, 128], strides = [1, 1]} : vector<8x384xf32> to vector<8x128xf32>
    %263 = arith.addf %262, %14 : vector<8x128xf32>
    %264 = arith.mulf %252, %263 : vector<8x128xf32>
    %265 = arith.addf %261, %264 : vector<8x128xf32>
    %266 = math.tanh %265 : vector<8x128xf32>
    %cst_63 = arith.constant 1.000000e+00 : f32
    %267 = vector.broadcast %cst_63 : f32 to vector<8x128xf32>
    %268 = arith.subf %267, %260 : vector<8x128xf32>
    %269 = arith.mulf %268, %266 : vector<8x128xf32>
    %270 = arith.mulf %260, %239 : vector<8x128xf32>
    %271 = arith.addf %269, %270 : vector<8x128xf32>
    %c8_i32_64 = arith.constant 8 : i32
    %c0_65 = arith.constant 0 : index
    %c0_66 = arith.constant 0 : index
    %272 = vector.load %arg11[%c0_65, %c0_66] : memref<8x128xf32, #tpu.memory_space<vmem>>, vector<8x128xf32>
    tpu.vector_store %arg11[%c0_65, %c0_66], %271 {strides = array<i32>} : memref<8x128xf32, #tpu.memory_space<vmem>>, vector<8x128xf32>,
    %c0_i32_67 = arith.constant 0 : i32
    %273 = arith.cmpi eq, %arg1, %c0_i32_67 : i32
    %274 = arith.extui %273 : i1 to i32
    %c0_i32_68 = arith.constant 0 : i32
    %275 = arith.cmpi ne, %274, %c0_i32_68 : i32
    scf.if %275 {
      %c0_69 = arith.constant 0 : index
      %c0_70 = arith.constant 0 : index
      %276 = vector.load %arg11[%c0_69, %c0_70] : memref<8x128xf32, #tpu.memory_space<vmem>>, vector<8x128xf32>
      %c0_71 = arith.constant 0 : index
      %c0_72 = arith.constant 0 : index
      %277 = vector.load %arg7[%c0_71, %c0_72] : memref<128x4xf32, #tpu.memory_space<vmem>>, vector<128x4xf32>
      %cst_73 = arith.constant dense<0.000000e+00> : vector<8x4xf32>
      %278 = tpu.matmul %276, %277, %cst_73 {dimension_numbers = #tpu.dot_dimension_numbers<[1], [0], [0], [1], [0, 0, 1, 1], [], []>} : vector<8x128xf32>, vector<128x4xf32>, vector<8x4xf32> -> vector<8x4xf32>
      %c0_74 = arith.constant 0 : index
      %c0_75 = arith.constant 0 : index
      %279 = vector.load %arg8[%c0_74, %c0_75] : memref<1x4xf32, #tpu.memory_space<vmem>>, vector<1x4xf32>
      %280 = vector.broadcast %279 : vector<1x4xf32> to vector<8x4xf32>
      %281 = arith.addf %278, %280 : vector<8x4xf32>
      %c0_76 = arith.constant 0 : index
      %c0_77 = arith.constant 0 : index
      %c0_78 = arith.constant 0 : index
      %282 = vector.load %arg9[%c0_76, %c0_77, %c0_78] : memref<1x8x4xf32, #tpu.memory_space<vmem>>, vector<1x8x4xf32>
      %283 = vector.shape_cast %282 : vector<1x8x4xf32> to vector<8x4xf32>
      %284 = vector.shape_cast %281 : vector<8x4xf32> to vector<1x8x4xf32>
      tpu.vector_store %arg9[%c0_76, %c0_77, %c0_78], %284 {strides = array<i32>} : memref<1x8x4xf32, #tpu.memory_space<vmem>>, vector<1x8x4xf32>,
    } else {
    }
    return
  }
  func.func @transform_0(%arg0: i32, %arg1: i32) -> (i32, i32, i32, i32) {
    %c0_i32 = arith.constant 0 : i32
    %c0_i32_0 = arith.constant 0 : i32
    %c0_i32_1 = arith.constant 0 : i32
    return %arg0, %arg1, %c0_i32, %c0_i32_0 : i32, i32, i32, i32
  }
  func.func @transform_1(%arg0: i32, %arg1: i32) -> (i32, i32) {
    %c0_i32 = arith.constant 0 : i32
    %c0_i32_0 = arith.constant 0 : i32
    %c0_i32_1 = arith.constant 0 : i32
    return %c0_i32, %c0_i32_0 : i32, i32
  }
  func.func @transform_2(%arg0: i32, %arg1: i32) -> (i32, i32) {
    %c0_i32 = arith.constant 0 : i32
    %c0_i32_0 = arith.constant 0 : i32
    %c0_i32_1 = arith.constant 0 : i32
    return %c0_i32, %c0_i32_0 : i32, i32
  }
  func.func @transform_3(%arg0: i32, %arg1: i32) -> (i32, i32) {
    %c0_i32 = arith.constant 0 : i32
    %c0_i32_0 = arith.constant 0 : i32
    %c0_i32_1 = arith.constant 0 : i32
    return %c0_i32, %c0_i32_0 : i32, i32
  }
  func.func @transform_4(%arg0: i32, %arg1: i32) -> (i32, i32) {
    %c0_i32 = arith.constant 0 : i32
    %c0_i32_0 = arith.constant 0 : i32
    %c0_i32_1 = arith.constant 0 : i32
    return %c0_i32, %c0_i32_0 : i32, i32
  }
  func.func @transform_5(%arg0: i32, %arg1: i32) -> (i32, i32) {
    %c0_i32 = arith.constant 0 : i32
    %c0_i32_0 = arith.constant 0 : i32
    %c0_i32_1 = arith.constant 0 : i32
    return %c0_i32, %c0_i32_0 : i32, i32
  }
  func.func @transform_6(%arg0: i32, %arg1: i32) -> (i32, i32) {
    %c0_i32 = arith.constant 0 : i32
    %c0_i32_0 = arith.constant 0 : i32
    %c0_i32_1 = arith.constant 0 : i32
    return %c0_i32, %c0_i32_0 : i32, i32
  }
  func.func @transform_7(%arg0: i32, %arg1: i32) -> (i32, i32, i32) {
    %c0_i32 = arith.constant 0 : i32
    %c0_i32_0 = arith.constant 0 : i32
    %c0_i32_1 = arith.constant 0 : i32
    return %arg0, %c0_i32, %c0_i32_0 : i32, i32, i32
  }
}

</mosaic_0001>

<bundles_post_ra>
// kernel: tpu_custom_call.1
= control target key start
LH: loop header
LB: loop body
LE: loop exit
PB: predicated region body
PF: predicated region fallthrough
CT: control target
= control target key end

     0   :  { %12 = vsyncpa [#allocation5], 0  ;;  %s3013_s24 = smov [#allocation4]   ;;  %s3593_s0 = inlined_call_operand.vmem [shape: f32[1,1,64,16], index: 0, kind: input, shape index: {}]   ;;  %s3594_s1 = inlined_call_operand.vmem [shape: f32[16,384], index: 1, kind: input, shape index: {}]   ;;  %s3595_s2 = inlined_call_operand.hbm [shape: f32[128,384], index: 2, kind: input, shape index: {}]   ;;  %s3596_s3 = inlined_call_operand.vmem [shape: f32[1,384], index: 3, kind: input, shape index: {}]   ;;  %s3597_s4 = inlined_call_operand.vmem [shape: f32[1,128], index: 4, kind: input, shape index: {}]   ;;  %s3598_s5 = inlined_call_operand.vmem [shape: f32[128,4], index: 5, kind: input, shape index: {}]   ;;  %s3599_s6 = inlined_call_operand.vmem [shape: f32[1,4], index: 6, kind: input, shape index: {}]   ;;  %s3600_s7 = inlined_call_operand.vmem [shape: f32[1,8,4], index: 7, kind: output, shape index: {}]  }
   0x1   :  { %s22_s25 = sshll.u32 %s3013_s24, 4  ;;  %s2989_s28 = scalar_lea.hbm %s3595_s2, 6144  ;;  %s23_s25 = int_to_ptr.vmem [resolvable:$true] %s22_s25 }
   0x2   :  { %p2990_p0 = scmp.ne.s32.totalorder %s3595_s2, %s2989_s28  ;;  %p2993_p1 = scmp.lt.u32.totalorder %s2989_s28, %s3595_s2 }
   0x4   :  { %p2995_p2 = pnand %p2993_p1, %p2990_p0 }
   0x6   :  { %2998 = shalt.err (!%p2995_p2)
}
   0x7   :  { %s2999_s10 = scalar_lea.vmem %s23_s25, 6144  ;;  %p3004_p4 = scmp.lt.s32.totalorder %s23_s25, %s23_s25 }
   0x8   :  { %p3000_p3 = scmp.ne.s32.totalorder %s23_s25, %s2999_s10  ;;  %p3005_p5 = scmp.lt.s32.totalorder %s2999_s10, %s2999_s10 }
   0xa   :  { %p3006_p6 = por %p3005_p5, %p3004_p4 }
   0xc   :  { %p3007_p7 = pnand %p3006_p6, %p3000_p3 }
   0xe   :  { %3010 = shalt.err (!%p3007_p7)
}
   0xf   :  { %s3014_s11 = smov 384   ;;  %s3015_s12 = smov 24  }
  0x10   :  { %28 = dma.hbm_to_vmem [thread:$0]  %s3595_s2, 6144, %s23_s25, [#allocation5], %s3014_s11, %s3014_s11, %s3015_s12  }
  0x11   :  { %3011 = dma.done.wait [#allocation5], 6144  }
  0x12   :  { %3012 = vsyncadd [#allocation5], 4294961152  ;;  %v3016_v0 = vmov 0.0   ;;  %v54_v1 = vld [vmem:[%s3594_s1 + $0x8] sm:$0xff]  ;;  %v57_v2 = vld [vmem:[%s3594_s1 + $0x20] sm:$0xff]  ;;  %vm76_vm0 = vcmask 130048  }
  0x13   :  { %165 = vmatprep.mubr.f32.mxu0 %v3016_v0  ;;  %v53_v3 = vld [vmem:[%s3594_s1] sm:$0xff]  ;;  %v2391_v4 = vpack.c.bf16 %v57_v2, %v54_v1  ;;  %v56_v5 = vld [vmem:[%s3594_s1 + $0x18] sm:$0xff]  ;;  %v344_v7 = vld [vmem:[#allocation4 + $0x8] sm:$0xff]  ;;  %v3017_v48 = vmov 0.0|0.0   ;;  %vm3018_vm1 = vmmov 0   ;;  %vm1849_vm2 = vcmask 31744  }
  0x14   :  { %v45_v6 = vld [vmem:[%s3593_s0] sm:$0xff]  ;;  %v2393_v8 = vpack.c.bf16 %v56_v5, %v53_v3  ;;  %v346_v11 = vld [vmem:[#allocation4 + $0x18] sm:$0xff]  ;;  %v353_v14 = vld [vmem:[#allocation4 + $0x50] sm:$0xff] }
  0x15   :  { %v347_v9 = vld [vmem:[#allocation4 + $0x20] sm:$0xff]  ;;  %2064 = vmatprep.mubr.msk.f32.mxu1 %vm76_vm0, %v45_v6  ;;  %2392 = vmatprep.subr.bf16.mxu0 %v2391_v4  ;;  %v350_v13 = vld [vmem:[#allocation4 + $0x38] sm:$0xff]  ;;  %v349_v17 = vld [vmem:[#allocation4 + $0x30] sm:$0xff] }
  0x16   :  { %v343_v10 = vld [vmem:[#allocation4] sm:$0xff]  ;;  %v3088_v12 = vpack.c.bf16 %v347_v9, %v344_v7  ;;  %2394 = vmatpush1.bf16.msra.mxu0 %v2393_v8  ;;  %v3093_v16 = vpack.c.bf16 %v353_v14, %v350_v13  ;;  %v352_v18 = vld [vmem:[#allocation4 + $0x48] sm:$0xff]  ;;  %v358_v25 = vld [vmem:[#allocation4 + $0x78] sm:$0xff] }
  0x17   :  { %v3090_v15 = vpack.c.bf16 %v346_v11, %v343_v10  ;;  %v356_v19 = vld [vmem:[#allocation4 + $0x68] sm:$0xff]  ;;  %v359_v20 = vld [vmem:[#allocation4 + $0x80] sm:$0xff]  ;;  %v3101_v22 = vpack.c.bf16 %v352_v18, %v349_v17  ;;  %v362_v26 = vld [vmem:[#allocation4 + $0x98] sm:$0xff] }
  0x18   :  { %2400 = vmatprep.subr.bf16.mxu0 %v3088_v12  ;;  %v46_v21 = vld [vmem:[%s3593_s0 + $0x8] sm:$0xff]  ;;  %v3104_v23 = vpack.c.bf16 %v359_v20, %v356_v19  ;;  %v355_v24 = vld [vmem:[#allocation4 + $0x60] sm:$0xff]  ;;  %v365_v27 = vld [vmem:[#allocation4 + $0xb0] sm:$0xff] }
  0x19   :  { %1863 = vmatmul.mubr.msk.f32.vlgmr.msra.gmra.mrb[0].mxu0 %vm76_vm0, %v45_v6  ;;  %v55_v28 = vld [vmem:[%s3594_s1 + $0x10] sm:$0xff]  ;;  %v58_v29 = vld [vmem:[%s3594_s1 + $0x28] sm:$0xff]  ;;  %v3118_v31 = vpack.c.bf16 %v358_v25, %v355_v24  ;;  %v3121_v33 = vpack.c.bf16 %v365_v27, %v362_v26  ;;  %v371_v38 = vld [vmem:[#allocation4 + $0xe0] sm:$0xff] }
  0x1a   :  { %2402 = vmatpush1.bf16.msra.mxu0 %v3090_v15  ;;  %171 = vmatprep.mubr.f32.mxu0 %v3016_v0  ;;  %v47_v30 = vld [vmem:[%s3593_s0 + $0x10] sm:$0xff]  ;;  %v2395_v32 = vpack.c.bf16 %v58_v29, %v55_v28  ;;  %v364_v35 = vld [vmem:[#allocation4 + $0xa8] sm:$0xff]  ;;  %v48_v41 = vld [vmem:[%s3593_s0 + $0x18] sm:$0xff] }
  0x1b   :  { %2404 = vmatprep.subr.bf16.mxu0 %v3093_v16  ;;  %v361_v34 = vld [vmem:[#allocation4 + $0x90] sm:$0xff]  ;;  %v368_v37 = vld [vmem:[#allocation4 + $0xc8] sm:$0xff]  ;;  %v351_v43 = vld [vmem:[#allocation4 + $0x40] sm:$0xff] }
  0x1c   :  { %v345_v36 = vld [vmem:[#allocation4 + $0x10] sm:$0xff]  ;;  %2396 = vmatprep.subr.bf16.mxu1 %v2395_v32  ;;  %v348_v39 = vld [vmem:[#allocation4 + $0x28] sm:$0xff]  ;;  %v3131_v42 = vpack.c.bf16 %v364_v35, %v361_v34  ;;  %v354_v44 = vld [vmem:[#allocation4 + $0x58] sm:$0xff]  ;;  %v3134_v45 = vpack.c.bf16 %v371_v38, %v368_v37  ;;  %v61_v35 = vlaneseq }
  0x1d   :  { %1864 = vmatmul.mubr.msk.f32.gmra.mrb[2].mxu0 %vm76_vm0, %v46_v21  ;;  %2398 = vmatpush3.bf16.msra.mxu1 %v2395_v32  ;;  %v3124_v40 = vpack.c.bf16 %v348_v39, %v345_v36  ;;  %v367_v46 = vld [vmem:[#allocation4 + $0xc0] sm:$0xff]  ;;  %v370_v47 = vld [vmem:[#allocation4 + $0xd8] sm:$0xff]  ;;  %v377_v50 = vld [vmem:[#allocation4 + $0x110] sm:$0xff]  ;;  %v3140_v51 = vpack.c.bf16 %v354_v44, %v351_v43 }
  0x1e   :  { %2406 = vmatpush1.bf16.msra.mxu0 %v3101_v22  ;;  %177 = vmatprep.mubr.f32.mxu0 %v3016_v0  ;;  %v374_v49 = vld [vmem:[#allocation4 + $0xf8] sm:$0xff]  ;;  %v49_v52 = vld [vmem:[%s3593_s0 + $0x20] sm:$0xff]  ;;  %v3147_v53 = vpack.c.bf16 %v370_v47, %v367_v46  ;;  %v357_v54 = vld [vmem:[#allocation4 + $0x70] sm:$0xff]  ;;  %v62_v36 = vshrl.u32 %v61_v35, 7 }
  0x1f   :  { %2408 = vmatprep.subr.bf16.mxu0 %v3104_v23  ;;  %2431 = vmatprep.subr.bf16.mxu1 %v3017_v48  ;;  %v360_v55 = vld [vmem:[#allocation4 + $0x88] sm:$0xff]  ;;  %v3150_v56 = vpack.c.bf16 %v377_v50, %v374_v49  ;;  %v373_v57 = vld [vmem:[#allocation4 + $0xf0] sm:$0xff]  ;;  %v383_v60 = vld [vmem:[#allocation4 + $0x140] sm:$0xff] }
  0x20   :  { %2065 = vmatmul.mubr.msk.f32.vlgmr.msra.gmra.mrb[0].mxu1 %vm76_vm0, %v46_v21  ;;  %v376_v58 = vld [vmem:[#allocation4 + $0x108] sm:$0xff]  ;;  %v3156_v61 = vpack.c.bf16 %v360_v55, %v357_v54  ;;  %v363_v1 = vld [vmem:[#allocation4 + $0xa0] sm:$0xff]  ;;  %v366_v2 = vld [vmem:[#allocation4 + $0xb8] sm:$0xff]  ;;  %v71_v37 = vsub.s32 2, %v62_v36  ;;  %v67_v55 = vsub.s32 1, %v62_v36 }
  0x21   :  { %1865 = vmatmul.mubr.msk.f32.gmra.mrb[4].mxu0 %vm76_vm0, %v47_v30  ;;  %2433 = vmatpush3.bf16.msra.mxu1 %v3124_v40  ;;  %v380_v59 = vld [vmem:[#allocation4 + $0x128] sm:$0xff]  ;;  %v3163_v63 = vpack.c.bf16 %v376_v58, %v373_v57  ;;  %v379_v4 = vld [vmem:[#allocation4 + $0x120] sm:$0xff]  ;;  %v382_v5 = vld [vmem:[#allocation4 + $0x138] sm:$0xff]  ;;  %v3172_v8 = vpack.c.bf16 %v366_v2, %v363_v1 }
  0x22   :  { %2410 = vmatpush1.bf16.msra.mxu0 %v3118_v31  ;;  %183 = vmatprep.mubr.f32.mxu0 %v3016_v0  ;;  %v50_v62 = vld [vmem:[%s3593_s0 + $0x28] sm:$0xff]  ;;  %v3166_v3 = vpack.c.bf16 %v383_v60, %v380_v59  ;;  %v386_v6 = vld [vmem:[#allocation4 + $0x158] sm:$0xff]  ;;  %v389_v7 = vld [vmem:[#allocation4 + $0x170] sm:$0xff]  ;;  %v3179_v10 = vpack.c.bf16 %v382_v5, %v379_v4 }
  0x23   :  { %2412 = vmatprep.subr.bf16.mxu0 %v3121_v33  ;;  %2434 = vmatprep.subr.bf16.mxu1 %v3017_v48  ;;  %v51_v9 = vld [vmem:[%s3593_s0 + $0x30] sm:$0xff]  ;;  %v372_v13 = vld [vmem:[#allocation4 + $0xe8] sm:$0xff]  ;;  %v3182_v14 = vpack.c.bf16 %v389_v7, %v386_v6  ;;  %v52_v20 = vld [vmem:[%s3593_s0 + $0x38] sm:$0xff] }
  0x24   :  { %2067 = vmatprep.mubr.msk.f32.mxu1 %vm76_vm0, %v47_v30  ;;  %v369_v11 = vld [vmem:[#allocation4 + $0xd0] sm:$0xff]  ;;  %v388_v18 = vld [vmem:[#allocation4 + $0x168] sm:$0xff]  ;;  %v375_v24 = vld [vmem:[#allocation4 + $0x100] sm:$0xff] }
  0x25   :  { %1866 = vmatmul.mubr.msk.f32.gmra.mrb[6].mxu0 %vm76_vm0, %v48_v41  ;;  %2436 = vmatpush3.bf16.msra.mxu1 %v3140_v51  ;;  %v385_v17 = vld [vmem:[#allocation4 + $0x150] sm:$0xff]  ;;  %v3188_v19 = vpack.c.bf16 %v372_v13, %v369_v11  ;;  %v378_v25 = vld [vmem:[#allocation4 + $0x118] sm:$0xff]  ;;  %v384_v28 = vld [vmem:[#allocation4 + $0x148] sm:$0xff] }
  0x26   :  { %2414 = vmatpush1.bf16.msra.mxu0 %v3131_v42  ;;  %189 = vmatprep.mubr.f32.mxu0 %v3016_v0  ;;  %v3195_v21 = vpack.c.bf16 %v388_v18, %v385_v17  ;;  %v3202_v26 = vpack.c.bf16 %v378_v25, %v375_v24  ;;  %v381_v27 = vld [vmem:[#allocation4 + $0x130] sm:$0xff]  ;;  %v387_v30 = vld [vmem:[#allocation4 + $0x160] sm:$0xff]  ;;  %v390_v32 = vld [vmem:[#allocation4 + $0x178] sm:$0xff] }
  0x27   :  { %2416 = vmatprep.subr.bf16.mxu0 %v3134_v45  ;;  %2437 = vmatprep.subr.bf16.mxu1 %v3017_v48  ;;  %v3212_v29 = vpack.c.bf16 %v384_v28, %v381_v27  ;;  %v3221_v34 = vpack.c.bf16 %v390_v32, %v387_v30  ;;  %v59_v38 = vld [vmem:[%s3596_s3] sm:$0x7] }
  0x28   :  { %2068 = vmatmul.mubr.msk.f32.gmra.mrb[2].mxu1 %vm76_vm0, %v48_v41  ;;  %v72_v39 = vrot.slane %v59_v38, %v71_v37  ;;  %v3274_v2 = vrot.slane %v59_v38, %v67_v55  ;;  %v3285_v28 = vld [vmem:[%s3597_s4] ss:$0 sm:$0xff] }
  0x29   :  { %1867 = vmatmul.mubr.msk.f32.gmra.mrb[8].mxu0 %vm76_vm0, %v49_v52  ;;  %2439 = vmatpush3.bf16.msra.mxu1 %v3156_v61 }
  0x2a   :  { %2418 = vmatpush1.bf16.msra.mxu0 %v3147_v53  ;;  %195 = vmatprep.mubr.f32.mxu0 %v3016_v0 }
  0x2b   :  { %2420 = vmatprep.subr.bf16.mxu0 %v3150_v56  ;;  %2440 = vmatprep.subr.bf16.mxu1 %v3017_v48 }
  0x2c   :  { %2070 = vmatprep.mubr.msk.f32.mxu1 %vm76_vm0, %v49_v52  ;;  %v63_v52 = vsub.s32 0, %v62_v36 }
  0x2d   :  { %1868 = vmatmul.mubr.msk.f32.gmra.mrb[10].mxu0 %vm76_vm0, %v50_v62  ;;  %2442 = vmatpush3.bf16.msra.mxu1 %v3172_v8 }
  0x2e   :  { %2422 = vmatpush1.bf16.msra.mxu0 %v3163_v63  ;;  %201 = vmatprep.mubr.f32.mxu0 %v3016_v0  ;;  %v3270_v59 = vrot.slane %v59_v38, %v63_v52 }
  0x2f   :  { %2424 = vmatprep.subr.bf16.mxu0 %v3166_v3  ;;  %2443 = vmatprep.subr.bf16.mxu1 %v3017_v48 }
  0x30   :  { %2071 = vmatmul.mubr.msk.f32.gmra.mrb[4].mxu1 %vm76_vm0, %v50_v62 }
  0x31   :  { %1869 = vmatmul.mubr.msk.f32.gmra.mrb[12].mxu0 %vm76_vm0, %v51_v9  ;;  %2445 = vmatpush3.bf16.msra.mxu1 %v3188_v19 }
  0x32   :  { %2426 = vmatpush1.bf16.msra.mxu0 %v3179_v10  ;;  %207 = vmatprep.mubr.f32.mxu0 %v3016_v0 }
  0x33   :  { %2428 = vmatprep.subr.bf16.mxu0 %v3182_v14  ;;  %2446 = vmatprep.subr.bf16.mxu1 %v3017_v48 }
  0x34   :  { %2073 = vmatprep.mubr.msk.f32.mxu1 %vm76_vm0, %v51_v9 }
  0x35   :  { %1870 = vmatmul.mubr.msk.f32.gmra.mrb[14].mxu0 %vm76_vm0, %v52_v20  ;;  %2074 = vmatmul.mubr.msk.f32.gmra.mrb[6].mxu1 %vm76_vm0, %v52_v20 }
  0x36   :  { %2430 = vmatpush1.bf16.msra.mxu0 %v3195_v21  ;;  %469 = vmatprep.mubr.f32.mxu0 %v3016_v0 }
  0x37   :  { %2456 = vmatprep.subr.bf16.mxu0 %v3088_v12  ;;  %2448 = vmatpush3.bf16.msra.mxu1 %v3202_v26 }
  0x38   :  { %2449 = vmatprep.subr.bf16.mxu1 %v3017_v48  ;;  %2108 = vmatprep.mubr.msk.f32.mxu1 %vm3018_vm1, %v3016_v0 }
  0x39   :  { %470 = vmatmul.mubr.f32.vlgmr.msra.gmra.mrb[0].mxu0 %v3016_v0 }
  0x3a   :  { %2458 = vmatpush1.bf16.msra.mxu0 %v3090_v15  ;;  %638 = vmatprep.mubr.f32.mxu0 %v3016_v0 }
  0x3b   :  { %2460 = vmatprep.subr.bf16.mxu0 %v3093_v16  ;;  %2451 = vmatpush3.bf16.msra.mxu1 %v3212_v29 }
  0x3c   :  { %2452 = vmatprep.subr.bf16.mxu1 %v3017_v48 }
  0x3e   :  { %2462 = vmatpush1.bf16.msra.mxu0 %v3101_v22 }
  0x3f   :  { %2464 = vmatprep.subr.bf16.mxu0 %v3104_v23  ;;  %2454 = vmatpush3.bf16.msra.mxu1 %v3221_v34 }
  0x40   :  { %2487 = vmatprep.subr.bf16.mxu1 %v3017_v48 }
  0x42   :  { %2466 = vmatpush1.bf16.msra.mxu0 %v3118_v31  ;;  %2109 = vmatmul.mubr.f32.vlgmr.msra.gmra.mrb[8].mxu1 %v3016_v0 }
  0x43   :  { %2468 = vmatprep.subr.bf16.mxu0 %v3121_v33  ;;  %2489 = vmatpush3.bf16.msra.mxu1 %v3124_v40 }
  0x44   :  { %2143 = vmatprep.mubr.msk.f32.mxu1 %vm3018_vm1, %v3016_v0  ;;  %2490 = vmatprep.subr.bf16.mxu1 %v3017_v48 }
  0x46   :  { %2470 = vmatpush1.bf16.msra.mxu0 %v3131_v42 }
  0x47   :  { %2472 = vmatprep.subr.bf16.mxu0 %v3134_v45  ;;  %2492 = vmatpush3.bf16.msra.mxu1 %v3140_v51 }
  0x48   :  { %2493 = vmatprep.subr.bf16.mxu1 %v3017_v48 }
  0x4a   :  { %2474 = vmatpush1.bf16.msra.mxu0 %v3147_v53 }
  0x4b   :  { %2476 = vmatprep.subr.bf16.mxu0 %v3150_v56  ;;  %2495 = vmatpush3.bf16.msra.mxu1 %v3156_v61 }
  0x4c   :  { %2496 = vmatprep.subr.bf16.mxu1 %v3017_v48 }
  0x4e   :  { %2478 = vmatpush1.bf16.msra.mxu0 %v3163_v63 }
  0x4f   :  { %2480 = vmatprep.subr.bf16.mxu0 %v3166_v3  ;;  %2498 = vmatpush3.bf16.msra.mxu1 %v3172_v8 }
  0x50   :  { %2499 = vmatprep.subr.bf16.mxu1 %v3017_v48 }
  0x52   :  { %2482 = vmatpush1.bf16.msra.mxu0 %v3179_v10 }
  0x53   :  { %2484 = vmatprep.subr.bf16.mxu0 %v3182_v14  ;;  %2501 = vmatpush3.bf16.msra.mxu1 %v3188_v19 }
  0x54   :  { %2502 = vmatprep.subr.bf16.mxu1 %v3017_v48 }
  0x56   :  { %2486 = vmatpush1.bf16.msra.mxu0 %v3195_v21 }
  0x57   :  { %2512 = vmatprep.subr.bf16.mxu0 %v3088_v12  ;;  %2504 = vmatpush3.bf16.msra.mxu1 %v3202_v26 }
  0x58   :  { %2505 = vmatprep.subr.bf16.mxu1 %v3017_v48 }
  0x5b   :  { %2507 = vmatpush3.bf16.msra.mxu1 %v3212_v29 }
  0x5c   :  { %2508 = vmatprep.subr.bf16.mxu1 %v3017_v48 }
  0x5f   :  { %2510 = vmatpush3.bf16.msra.mxu1 %v3221_v34 }
  0x60   :  { %2543 = vmatprep.subr.bf16.mxu1 %v3017_v48 }
  0xf3   :  { %v2066_v41 = vpop.f32.mrb[0].mxu1 }
  0xf4   :  { %v3262_v43 = vadd.f32 %v2066_v41, %v72_v39  ;;  %v280_v44 = vpop.f32.mrb[1].mxu1 }
  0xf5   :  { %v281_v36 = vadd.f32 %v280_v44, %v72_v39 }
  0xfb   :  { %v2069_v46 = vpop.f32.mrb[2].mxu1 }
  0xfc   :  { %v3264_v47 = vadd.f32 %v2069_v46, %v72_v39  ;;  %v290_v49 = vpop.f32.mrb[3].mxu1 }
  0xfd   :  { %v3266_v50 = vadd.f32 %v290_v49, %v72_v39 }
 0x103   :  { %v2072_v54 = vpop.f32.mrb[4].mxu1 }
 0x104   :  { %v3268_v57 = vadd.f32 %v2072_v54, %v72_v39  ;;  %v300_v58 = vpop.f32.mrb[5].mxu1 }
 0x105   :  { %v3272_v60 = vadd.f32 %v300_v58, %v72_v39 }
 0x108   :  { %v2075_v62 = vpop.f32.mrb[6].mxu1 }
 0x109   :  { %v3276_v4 = vadd.f32 %v2075_v62, %v72_v39  ;;  %v310_v5 = vpop.f32.mrb[7].mxu1 }
 0x10a   :  { %v3279_v9 = vadd.f32 %v310_v5, %v72_v39 }
 0x10c   :  { %v471_v1 = vpop.f32.mrb[0].mxu0 }
 0x10d   :  { %v2871_v6 = vadd.f32 %v471_v1, %v3270_v59  ;;  %v473_v7 = vpop.f32.mrb[1].mxu0 }
 0x10e   :  { %v2872_v13 = vadd.f32 %v473_v7, %v3274_v2 }
 0x10f   :  { %v1880_v11 = vmul.f32 -1.442695, %v2871_v6 }
 0x110   :  { %v1881_v17 = vmul.f32 -1.442695, %v2872_v13 }
 0x111   :  { %2909 = vpow2.f32 %v1880_v11 }
 0x112   :  { %2911 = vpow2.f32 %v1881_v17 }
 0x115   :  { %v542_v18 = vpop.f32.mrb[8].mxu1 }
 0x116   :  { %v2110_v20 = vpop.f32.mrb[9].mxu1  ;;  %v560_v32 = vadd.f32 %v3285_v28, %v542_v18 }
 0x11b   :  { %v2910_v24 = vpop.eup %2909 }
 0x11c   :  { %v550_v25 = vadd.f32 1.0, %v2910_v24  ;;  %v2912_v27 = vpop.eup %2911 }
 0x11d   :  { %v557_v30 = vadd.f32 1.0, %v2912_v27 }
 0x11e   :  { %2913 = vrcp.f32 %v550_v25 }
 0x11f   :  { %2915 = vrcp.f32 %v557_v30 }
 0x128   :  { %v2914_v35 = vpop.eup %2913 }
 0x129   :  { %v561_v37 = vmul.f32 %v2914_v35, %v560_v32  ;;  %v2916_v41 = vpop.eup %2915 }
 0x12a   :  { %v564_v46 = vsub.f32 1.0, %v2916_v41  ;;  %v566_v54 = vmul.f32 0.0, %v2916_v41 }
 0x12b   :  { %v562_v38 = vadd.f32 %v561_v37, %v281_v36 }
 0x12d   :  { %2917 = vtanh.f32 %v562_v38 }
 0x137   :  { %v2918_v49 = vpop.eup %2917 }
 0x138   :  { %v565_v52 = vmul.f32 %v2918_v49, %v564_v46 }
 0x13a   :  { %v567_v55 = vadd.f32 %v566_v54, %v565_v52 }
 0x13c   :  { %639 = vmatmul.mubr.f32.vlgmr.msra.gmra.mrb[2].mxu0 %v567_v55  ;;  %2144 = vmatmul.mubr.f32.vlgmr.msra.gmra.mrb[10].mxu1 %v567_v55 }
 0x13d   :  { %2514 = vmatpush1.bf16.msra.mxu0 %v3090_v15  ;;  %2545 = vmatpush3.bf16.msra.mxu1 %v3124_v40 }
 0x13e   :  { %2516 = vmatprep.subr.bf16.mxu0 %v3093_v16  ;;  %2546 = vmatprep.subr.bf16.mxu1 %v3017_v48 }
 0x13f   :  { %807 = vmatprep.mubr.f32.mxu0 %v3016_v0  ;;  %2178 = vmatprep.mubr.msk.f32.mxu1 %vm3018_vm1, %v3016_v0 }
 0x141   :  { %2518 = vmatpush1.bf16.msra.mxu0 %v3101_v22  ;;  %2548 = vmatpush3.bf16.msra.mxu1 %v3140_v51 }
 0x142   :  { %2520 = vmatprep.subr.bf16.mxu0 %v3104_v23  ;;  %2549 = vmatprep.subr.bf16.mxu1 %v3017_v48 }
 0x145   :  { %2522 = vmatpush1.bf16.msra.mxu0 %v3118_v31  ;;  %2551 = vmatpush3.bf16.msra.mxu1 %v3156_v61 }
 0x146   :  { %2524 = vmatprep.subr.bf16.mxu0 %v3121_v33  ;;  %2552 = vmatprep.subr.bf16.mxu1 %v3017_v48 }
 0x149   :  { %2526 = vmatpush1.bf16.msra.mxu0 %v3131_v42  ;;  %2554 = vmatpush3.bf16.msra.mxu1 %v3172_v8 }
 0x14a   :  { %2528 = vmatprep.subr.bf16.mxu0 %v3134_v45  ;;  %2555 = vmatprep.subr.bf16.mxu1 %v3017_v48 }
 0x14d   :  { %2530 = vmatpush1.bf16.msra.mxu0 %v3147_v53  ;;  %2557 = vmatpush3.bf16.msra.mxu1 %v3188_v19 }
 0x14e   :  { %2532 = vmatprep.subr.bf16.mxu0 %v3150_v56  ;;  %2558 = vmatprep.subr.bf16.mxu1 %v3017_v48 }
 0x151   :  { %2534 = vmatpush1.bf16.msra.mxu0 %v3163_v63  ;;  %2560 = vmatpush3.bf16.msra.mxu1 %v3202_v26 }
 0x152   :  { %2536 = vmatprep.subr.bf16.mxu0 %v3166_v3  ;;  %2561 = vmatprep.subr.bf16.mxu1 %v3017_v48 }
 0x155   :  { %2538 = vmatpush1.bf16.msra.mxu0 %v3179_v10  ;;  %2563 = vmatpush3.bf16.msra.mxu1 %v3212_v29 }
 0x156   :  { %2540 = vmatprep.subr.bf16.mxu0 %v3182_v14  ;;  %2564 = vmatprep.subr.bf16.mxu1 %v3017_v48 }
 0x159   :  { %2542 = vmatpush1.bf16.msra.mxu0 %v3195_v21  ;;  %2566 = vmatpush3.bf16.msra.mxu1 %v3221_v34 }
 0x15a   :  { %2568 = vmatprep.subr.bf16.mxu0 %v3088_v12  ;;  %2599 = vmatprep.subr.bf16.mxu1 %v3017_v48 }
 0x20f   :  { %v640_v39 = vpop.f32.mrb[2].mxu0  ;;  %v711_v44 = vpop.f32.mrb[10].mxu1 }
 0x210   :  { %v2873_v58 = vadd.f32 %v640_v39, %v3270_v59  ;;  %v642_v62 = vpop.f32.mrb[3].mxu0  ;;  %v2145_v1 = vpop.f32.mrb[11].mxu1  ;;  %v729_v20 = vadd.f32 %v3285_v28, %v711_v44 }
 0x211   :  { %v2874_v6 = vadd.f32 %v642_v62, %v3274_v2 }
 0x212   :  { %v1882_v5 = vmul.f32 -1.442695, %v2873_v58 }
 0x213   :  { %v1883_v7 = vmul.f32 -1.442695, %v2874_v6 }
 0x214   :  { %2919 = vpow2.f32 %v1882_v5 }
 0x215   :  { %2921 = vpow2.f32 %v1883_v7 }
 0x21e   :  { %v2920_v11 = vpop.eup %2919 }
 0x21f   :  { %v719_v13 = vadd.f32 1.0, %v2920_v11  ;;  %v2922_v17 = vpop.eup %2921 }
 0x220   :  { %v726_v18 = vadd.f32 1.0, %v2922_v17 }
 0x221   :  { %2923 = vrcp.f32 %v719_v13 }
 0x222   :  { %2925 = vrcp.f32 %v726_v18 }
 0x22b   :  { %v2924_v24 = vpop.eup %2923 }
 0x22c   :  { %v730_v25 = vmul.f32 %v2924_v24, %v729_v20  ;;  %v2926_v30 = vpop.eup %2925 }
 0x22d   :  { %v733_v32 = vsub.f32 1.0, %v2926_v30  ;;  %v735_v37 = vmul.f32 %v2926_v30, %v567_v55 }
 0x22e   :  { %v731_v27 = vadd.f32 %v730_v25, %v3262_v43 }
 0x230   :  { %2927 = vtanh.f32 %v731_v27 }
 0x23a   :  { %v2928_v35 = vpop.eup %2927 }
 0x23b   :  { %v734_v36 = vmul.f32 %v2928_v35, %v733_v32 }
 0x23d   :  { %v736_v38 = vadd.f32 %v735_v37, %v734_v36 }
 0x23f   :  { %808 = vmatmul.mubr.f32.vlgmr.msra.gmra.mrb[4].mxu0 %v736_v38  ;;  %2179 = vmatmul.mubr.f32.vlgmr.msra.gmra.mrb[12].mxu1 %v736_v38 }
 0x240   :  { %2570 = vmatpush1.bf16.msra.mxu0 %v3090_v15  ;;  %2601 = vmatpush3.bf16.msra.mxu1 %v3124_v40 }
 0x241   :  { %2572 = vmatprep.subr.bf16.mxu0 %v3093_v16  ;;  %2602 = vmatprep.subr.bf16.mxu1 %v3017_v48 }
 0x242   :  { %976 = vmatprep.mubr.f32.mxu0 %v3016_v0  ;;  %2213 = vmatprep.mubr.msk.f32.mxu1 %vm3018_vm1, %v3016_v0 }
 0x244   :  { %2574 = vmatpush1.bf16.msra.mxu0 %v3101_v22  ;;  %2604 = vmatpush3.bf16.msra.mxu1 %v3140_v51 }
 0x245   :  { %2576 = vmatprep.subr.bf16.mxu0 %v3104_v23  ;;  %2605 = vmatprep.subr.bf16.mxu1 %v3017_v48 }
 0x248   :  { %2578 = vmatpush1.bf16.msra.mxu0 %v3118_v31  ;;  %2607 = vmatpush3.bf16.msra.mxu1 %v3156_v61 }
 0x249   :  { %2580 = vmatprep.subr.bf16.mxu0 %v3121_v33  ;;  %2608 = vmatprep.subr.bf16.mxu1 %v3017_v48 }
 0x24c   :  { %2582 = vmatpush1.bf16.msra.mxu0 %v3131_v42  ;;  %2610 = vmatpush3.bf16.msra.mxu1 %v3172_v8 }
 0x24d   :  { %2584 = vmatprep.subr.bf16.mxu0 %v3134_v45  ;;  %2611 = vmatprep.subr.bf16.mxu1 %v3017_v48 }
 0x250   :  { %2586 = vmatpush1.bf16.msra.mxu0 %v3147_v53  ;;  %2613 = vmatpush3.bf16.msra.mxu1 %v3188_v19 }
 0x251   :  { %2588 = vmatprep.subr.bf16.mxu0 %v3150_v56  ;;  %2614 = vmatprep.subr.bf16.mxu1 %v3017_v48 }
 0x254   :  { %2590 = vmatpush1.bf16.msra.mxu0 %v3163_v63  ;;  %2616 = vmatpush3.bf16.msra.mxu1 %v3202_v26 }
 0x255   :  { %2592 = vmatprep.subr.bf16.mxu0 %v3166_v3  ;;  %2617 = vmatprep.subr.bf16.mxu1 %v3017_v48 }
 0x258   :  { %2594 = vmatpush1.bf16.msra.mxu0 %v3179_v10  ;;  %2619 = vmatpush3.bf16.msra.mxu1 %v3212_v29 }
 0x259   :  { %2596 = vmatprep.subr.bf16.mxu0 %v3182_v14  ;;  %2620 = vmatprep.subr.bf16.mxu1 %v3017_v48 }
 0x25c   :  { %2598 = vmatpush1.bf16.msra.mxu0 %v3195_v21  ;;  %2622 = vmatpush3.bf16.msra.mxu1 %v3221_v34 }
 0x25d   :  { %2624 = vmatprep.subr.bf16.mxu0 %v3088_v12  ;;  %2655 = vmatprep.subr.bf16.mxu1 %v3017_v48 }
 0x312   :  { %v809_v43 = vpop.f32.mrb[4].mxu0  ;;  %v880_v41 = vpop.f32.mrb[12].mxu1 }
 0x313   :  { %v2875_v46 = vadd.f32 %v809_v43, %v3270_v59  ;;  %v811_v49 = vpop.f32.mrb[5].mxu0  ;;  %v2180_v52 = vpop.f32.mrb[13].mxu1  ;;  %v898_v5 = vadd.f32 %v3285_v28, %v880_v41 }
 0x314   :  { %v2876_v55 = vadd.f32 %v811_v49, %v3274_v2 }
 0x315   :  { %v1884_v54 = vmul.f32 -1.442695, %v2875_v46 }
 0x316   :  { %v1885_v39 = vmul.f32 -1.442695, %v2876_v55 }
 0x317   :  { %2929 = vpow2.f32 %v1884_v54 }
 0x318   :  { %2931 = vpow2.f32 %v1885_v39 }
 0x321   :  { %v2930_v44 = vpop.eup %2929 }
 0x322   :  { %v888_v58 = vadd.f32 1.0, %v2930_v44  ;;  %v2932_v62 = vpop.eup %2931 }
 0x323   :  { %v895_v1 = vadd.f32 1.0, %v2932_v62 }
 0x324   :  { %2933 = vrcp.f32 %v888_v58 }
 0x325   :  { %2935 = vrcp.f32 %v895_v1 }
 0x32e   :  { %v2934_v6 = vpop.eup %2933 }
 0x32f   :  { %v899_v7 = vmul.f32 %v2934_v6, %v898_v5  ;;  %v2936_v13 = vpop.eup %2935 }
 0x330   :  { %v902_v17 = vsub.f32 1.0, %v2936_v13  ;;  %v904_v24 = vmul.f32 %v2936_v13, %v736_v38 }
 0x331   :  { %v900_v11 = vadd.f32 %v899_v7, %v3266_v50 }
 0x333   :  { %2937 = vtanh.f32 %v900_v11 }
 0x33d   :  { %v2938_v18 = vpop.eup %2937 }
 0x33e   :  { %v903_v20 = vmul.f32 %v2938_v18, %v902_v17 }
 0x340   :  { %v905_v25 = vadd.f32 %v904_v24, %v903_v20 }
 0x342   :  { %977 = vmatmul.mubr.f32.vlgmr.msra.gmra.mrb[6].mxu0 %v905_v25  ;;  %2214 = vmatmul.mubr.f32.vlgmr.msra.gmra.mrb[14].mxu1 %v905_v25 }
 0x343   :  { %2626 = vmatpush1.bf16.msra.mxu0 %v3090_v15  ;;  %2657 = vmatpush3.bf16.msra.mxu1 %v3124_v40 }
 0x344   :  { %2628 = vmatprep.subr.bf16.mxu0 %v3093_v16  ;;  %2658 = vmatprep.subr.bf16.mxu1 %v3017_v48 }
 0x345   :  { %1145 = vmatprep.mubr.f32.mxu0 %v3016_v0  ;;  %2248 = vmatprep.mubr.msk.f32.mxu1 %vm3018_vm1, %v3016_v0 }
 0x347   :  { %2630 = vmatpush1.bf16.msra.mxu0 %v3101_v22  ;;  %2660 = vmatpush3.bf16.msra.mxu1 %v3140_v51 }
 0x348   :  { %2632 = vmatprep.subr.bf16.mxu0 %v3104_v23  ;;  %2661 = vmatprep.subr.bf16.mxu1 %v3017_v48 }
 0x34b   :  { %2634 = vmatpush1.bf16.msra.mxu0 %v3118_v31  ;;  %2663 = vmatpush3.bf16.msra.mxu1 %v3156_v61 }
 0x34c   :  { %2636 = vmatprep.subr.bf16.mxu0 %v3121_v33  ;;  %2664 = vmatprep.subr.bf16.mxu1 %v3017_v48 }
 0x34f   :  { %2638 = vmatpush1.bf16.msra.mxu0 %v3131_v42  ;;  %2666 = vmatpush3.bf16.msra.mxu1 %v3172_v8 }
 0x350   :  { %2640 = vmatprep.subr.bf16.mxu0 %v3134_v45  ;;  %2667 = vmatprep.subr.bf16.mxu1 %v3017_v48 }
 0x353   :  { %2642 = vmatpush1.bf16.msra.mxu0 %v3147_v53  ;;  %2669 = vmatpush3.bf16.msra.mxu1 %v3188_v19 }
 0x354   :  { %2644 = vmatprep.subr.bf16.mxu0 %v3150_v56  ;;  %2670 = vmatprep.subr.bf16.mxu1 %v3017_v48 }
 0x357   :  { %2646 = vmatpush1.bf16.msra.mxu0 %v3163_v63  ;;  %2672 = vmatpush3.bf16.msra.mxu1 %v3202_v26 }
 0x358   :  { %2648 = vmatprep.subr.bf16.mxu0 %v3166_v3  ;;  %2673 = vmatprep.subr.bf16.mxu1 %v3017_v48 }
 0x35b   :  { %2650 = vmatpush1.bf16.msra.mxu0 %v3179_v10  ;;  %2675 = vmatpush3.bf16.msra.mxu1 %v3212_v29 }
 0x35c   :  { %2652 = vmatprep.subr.bf16.mxu0 %v3182_v14  ;;  %2676 = vmatprep.subr.bf16.mxu1 %v3017_v48 }
 0x35f   :  { %2654 = vmatpush1.bf16.msra.mxu0 %v3195_v21  ;;  %2678 = vmatpush3.bf16.msra.mxu1 %v3221_v34 }
 0x360   :  { %2680 = vmatprep.subr.bf16.mxu0 %v3088_v12  ;;  %2711 = vmatprep.subr.bf16.mxu1 %v3017_v48 }
 0x415   :  { %v978_v50 = vpop.f32.mrb[6].mxu0  ;;  %v1049_v27 = vpop.f32.mrb[14].mxu1 }
 0x416   :  { %v2877_v30 = vadd.f32 %v978_v50, %v3270_v59  ;;  %v980_v32 = vpop.f32.mrb[7].mxu0  ;;  %v2215_v35 = vpop.f32.mrb[15].mxu1  ;;  %v1067_v52 = vadd.f32 %v3285_v28, %v1049_v27 }
 0x417   :  { %v2878_v37 = vadd.f32 %v980_v32, %v3274_v2 }
 0x418   :  { %v1886_v36 = vmul.f32 -1.442695, %v2877_v30 }
 0x419   :  { %v1887_v38 = vmul.f32 -1.442695, %v2878_v37 }
 0x41a   :  { %2939 = vpow2.f32 %v1886_v36 }
 0x41b   :  { %2941 = vpow2.f32 %v1887_v38 }
 0x424   :  { %v2940_v43 = vpop.eup %2939 }
 0x425   :  { %v1057_v41 = vadd.f32 1.0, %v2940_v43  ;;  %v2942_v46 = vpop.eup %2941 }
 0x426   :  { %v1064_v49 = vadd.f32 1.0, %v2942_v46 }
 0x427   :  { %2943 = vrcp.f32 %v1057_v41 }
 0x428   :  { %2945 = vrcp.f32 %v1064_v49 }
 0x431   :  { %v2944_v54 = vpop.eup %2943 }
 0x432   :  { %v1068_v55 = vmul.f32 %v2944_v54, %v1067_v52  ;;  %v2946_v44 = vpop.eup %2945 }
 0x433   :  { %v1071_v58 = vsub.f32 1.0, %v2946_v44  ;;  %v1073_v5 = vmul.f32 %v2946_v44, %v905_v25 }
 0x434   :  { %v1069_v39 = vadd.f32 %v1068_v55, %v3264_v47 }
 0x436   :  { %2947 = vtanh.f32 %v1069_v39 }
 0x440   :  { %v2948_v62 = vpop.eup %2947 }
 0x441   :  { %v1072_v1 = vmul.f32 %v2948_v62, %v1071_v58 }
 0x443   :  { %v1074_v6 = vadd.f32 %v1073_v5, %v1072_v1 }
 0x445   :  { %1146 = vmatmul.mubr.f32.vlgmr.msra.gmra.mrb[8].mxu0 %v1074_v6  ;;  %2249 = vmatmul.mubr.f32.vlgmr.msra.gmra.mrb[16].mxu1 %v1074_v6 }
 0x446   :  { %2682 = vmatpush1.bf16.msra.mxu0 %v3090_v15  ;;  %2713 = vmatpush3.bf16.msra.mxu1 %v3124_v40 }
 0x447   :  { %2684 = vmatprep.subr.bf16.mxu0 %v3093_v16  ;;  %2714 = vmatprep.subr.bf16.mxu1 %v3017_v48 }
 0x448   :  { %1314 = vmatprep.mubr.f32.mxu0 %v3016_v0  ;;  %2283 = vmatprep.mubr.msk.f32.mxu1 %vm3018_vm1, %v3016_v0 }
 0x44a   :  { %2686 = vmatpush1.bf16.msra.mxu0 %v3101_v22  ;;  %2716 = vmatpush3.bf16.msra.mxu1 %v3140_v51 }
 0x44b   :  { %2688 = vmatprep.subr.bf16.mxu0 %v3104_v23  ;;  %2717 = vmatprep.subr.bf16.mxu1 %v3017_v48 }
 0x44e   :  { %2690 = vmatpush1.bf16.msra.mxu0 %v3118_v31  ;;  %2719 = vmatpush3.bf16.msra.mxu1 %v3156_v61 }
 0x44f   :  { %2692 = vmatprep.subr.bf16.mxu0 %v3121_v33  ;;  %2720 = vmatprep.subr.bf16.mxu1 %v3017_v48 }
 0x452   :  { %2694 = vmatpush1.bf16.msra.mxu0 %v3131_v42  ;;  %2722 = vmatpush3.bf16.msra.mxu1 %v3172_v8 }
 0x453   :  { %2696 = vmatprep.subr.bf16.mxu0 %v3134_v45  ;;  %2723 = vmatprep.subr.bf16.mxu1 %v3017_v48 }
 0x456   :  { %2698 = vmatpush1.bf16.msra.mxu0 %v3147_v53  ;;  %2725 = vmatpush3.bf16.msra.mxu1 %v3188_v19 }
 0x457   :  { %2700 = vmatprep.subr.bf16.mxu0 %v3150_v56  ;;  %2726 = vmatprep.subr.bf16.mxu1 %v3017_v48 }
 0x45a   :  { %2702 = vmatpush1.bf16.msra.mxu0 %v3163_v63  ;;  %2728 = vmatpush3.bf16.msra.mxu1 %v3202_v26 }
 0x45b   :  { %2704 = vmatprep.subr.bf16.mxu0 %v3166_v3  ;;  %2729 = vmatprep.subr.bf16.mxu1 %v3017_v48 }
 0x45e   :  { %2706 = vmatpush1.bf16.msra.mxu0 %v3179_v10  ;;  %2731 = vmatpush3.bf16.msra.mxu1 %v3212_v29 }
 0x45f   :  { %2708 = vmatprep.subr.bf16.mxu0 %v3182_v14  ;;  %2732 = vmatprep.subr.bf16.mxu1 %v3017_v48 }
 0x462   :  { %2710 = vmatpush1.bf16.msra.mxu0 %v3195_v21  ;;  %2734 = vmatpush3.bf16.msra.mxu1 %v3221_v34 }
 0x463   :  { %2736 = vmatprep.subr.bf16.mxu0 %v3088_v12  ;;  %2767 = vmatprep.subr.bf16.mxu1 %v3017_v48 }
 0x518   :  { %v1147_v47 = vpop.f32.mrb[8].mxu0  ;;  %v1218_v7 = vpop.f32.mrb[16].mxu1 }
 0x519   :  { %v2879_v11 = vadd.f32 %v1147_v47, %v3270_v59  ;;  %v1149_v13 = vpop.f32.mrb[9].mxu0  ;;  %v2250_v17 = vpop.f32.mrb[17].mxu1  ;;  %v1236_v32 = vadd.f32 %v3285_v28, %v1218_v7 }
 0x51a   :  { %v2880_v20 = vadd.f32 %v1149_v13, %v3274_v2 }
 0x51b   :  { %v1888_v18 = vmul.f32 -1.442695, %v2879_v11 }
 0x51c   :  { %v1889_v24 = vmul.f32 -1.442695, %v2880_v20 }
 0x51d   :  { %2949 = vpow2.f32 %v1888_v18 }
 0x51e   :  { %2951 = vpow2.f32 %v1889_v24 }
 0x527   :  { %v2950_v25 = vpop.eup %2949 }
 0x528   :  { %v1226_v50 = vadd.f32 1.0, %v2950_v25  ;;  %v2952_v27 = vpop.eup %2951 }
 0x529   :  { %v1233_v30 = vadd.f32 1.0, %v2952_v27 }
 0x52a   :  { %2953 = vrcp.f32 %v1226_v50 }
 0x52b   :  { %2955 = vrcp.f32 %v1233_v30  ;;  %v1758_v30 = vld [vmem:[%s3598_s5 + $0x10] sm:$0xff] }
 0x534   :  { %v2954_v35 = vpop.eup %2953 }
 0x535   :  { %v1237_v36 = vmul.f32 %v2954_v35, %v1236_v32  ;;  %v2956_v38 = vpop.eup %2955  ;;  %v1760_v35 = vld [vmem:[%s3598_s5 + $0x20] sm:$0xff] }
 0x536   :  { %v1240_v43 = vsub.f32 1.0, %v2956_v38  ;;  %v1242_v49 = vmul.f32 %v2956_v38, %v1074_v6  ;;  %v1762_v38 = vld [vmem:[%s3598_s5 + $0x30] sm:$0xff] }
 0x537   :  { %v1238_v37 = vadd.f32 %v1237_v36, %v3272_v60  ;;  %v1761_v36 = vld [vmem:[%s3598_s5 + $0x28] sm:$0xff] }
 0x539   :  { %2957 = vtanh.f32 %v1238_v37  ;;  %v2854_v37 = vpack.c.bf16 %v1761_v36, %v1760_v35 }
 0x543   :  { %v2958_v41 = vpop.eup %2957 }
 0x544   :  { %v1241_v46 = vmul.f32 %v2958_v41, %v1240_v43  ;;  %v1763_v43 = vld [vmem:[%s3598_s5 + $0x38] sm:$0xff] }
 0x545   :  { %v2857_v41 = vpack.c.bf16 %v1763_v43, %v1762_v38 }
 0x546   :  { %v1243_v52 = vadd.f32 %v1242_v49, %v1241_v46  ;;  %v1764_v46 = vld [vmem:[%s3598_s5 + $0x40] sm:$0xff]  ;;  %v1765_v49 = vld [vmem:[%s3598_s5 + $0x48] sm:$0xff] }
 0x548   :  { %1315 = vmatmul.mubr.f32.vlgmr.msra.gmra.mrb[10].mxu0 %v1243_v52  ;;  %2284 = vmatmul.mubr.f32.vlgmr.msra.gmra.mrb[18].mxu1 %v1243_v52 }
 0x549   :  { %2738 = vmatpush1.bf16.msra.mxu0 %v3090_v15  ;;  %2769 = vmatpush3.bf16.msra.mxu1 %v3124_v40 }
 0x54a   :  { %2740 = vmatprep.subr.bf16.mxu0 %v3093_v16  ;;  %2770 = vmatprep.subr.bf16.mxu1 %v3017_v48 }
 0x54b   :  { %1483 = vmatprep.mubr.f32.mxu0 %v3016_v0  ;;  %2318 = vmatprep.mubr.msk.f32.mxu1 %vm3018_vm1, %v3016_v0 }
 0x54d   :  { %2742 = vmatpush1.bf16.msra.mxu0 %v3101_v22  ;;  %2772 = vmatpush3.bf16.msra.mxu1 %v3140_v51 }
 0x54e   :  { %2744 = vmatprep.subr.bf16.mxu0 %v3104_v23  ;;  %2773 = vmatprep.subr.bf16.mxu1 %v3017_v48 }
 0x551   :  { %2746 = vmatpush1.bf16.msra.mxu0 %v3118_v31  ;;  %2775 = vmatpush3.bf16.msra.mxu1 %v3156_v61 }
 0x552   :  { %2748 = vmatprep.subr.bf16.mxu0 %v3121_v33  ;;  %2776 = vmatprep.subr.bf16.mxu1 %v3017_v48 }
 0x555   :  { %2750 = vmatpush1.bf16.msra.mxu0 %v3131_v42  ;;  %2778 = vmatpush3.bf16.msra.mxu1 %v3172_v8 }
 0x556   :  { %2752 = vmatprep.subr.bf16.mxu0 %v3134_v45  ;;  %2779 = vmatprep.subr.bf16.mxu1 %v3017_v48 }
 0x559   :  { %2754 = vmatpush1.bf16.msra.mxu0 %v3147_v53  ;;  %2781 = vmatpush3.bf16.msra.mxu1 %v3188_v19 }
 0x55a   :  { %2756 = vmatprep.subr.bf16.mxu0 %v3150_v56  ;;  %2782 = vmatprep.subr.bf16.mxu1 %v3017_v48 }
 0x55d   :  { %2758 = vmatpush1.bf16.msra.mxu0 %v3163_v63  ;;  %2784 = vmatpush3.bf16.msra.mxu1 %v3202_v26 }
 0x55e   :  { %2760 = vmatprep.subr.bf16.mxu0 %v3166_v3  ;;  %2785 = vmatprep.subr.bf16.mxu1 %v3017_v48 }
 0x561   :  { %2762 = vmatpush1.bf16.msra.mxu0 %v3179_v10  ;;  %2787 = vmatpush3.bf16.msra.mxu1 %v3212_v29 }
 0x562   :  { %2764 = vmatprep.subr.bf16.mxu0 %v3182_v14  ;;  %2788 = vmatprep.subr.bf16.mxu1 %v3017_v48 }
 0x565   :  { %2766 = vmatpush1.bf16.msra.mxu0 %v3195_v21  ;;  %2790 = vmatpush3.bf16.msra.mxu1 %v3221_v34 }
 0x566   :  { %2792 = vmatprep.subr.bf16.mxu0 %v3088_v12  ;;  %2823 = vmatprep.subr.bf16.mxu1 %v3017_v48 }
 0x61b   :  { %v1316_v60 = vpop.f32.mrb[10].mxu0  ;;  %v1387_v54 = vpop.f32.mrb[18].mxu1 }
 0x61c   :  { %v2881_v55 = vadd.f32 %v1316_v60, %v3270_v59  ;;  %v1318_v39 = vpop.f32.mrb[11].mxu0  ;;  %v2285_v44 = vpop.f32.mrb[19].mxu1  ;;  %v1405_v12 = vadd.f32 %v3285_v28, %v1387_v54  ;;  %v1766_v60 = vld [vmem:[%s3598_s5 + $0x50] sm:$0xff]  ;;  %v1767_v54 = vld [vmem:[%s3598_s5 + $0x58] sm:$0xff] }
 0x61d   :  { %v2882_v62 = vadd.f32 %v1318_v39, %v3274_v2  ;;  %v1768_v39 = vld [vmem:[%s3598_s5 + $0x60] sm:$0xff]  ;;  %v1769_v44 = vld [vmem:[%s3598_s5 + $0x68] sm:$0xff] }
 0x61e   :  { %v1890_v58 = vmul.f32 -1.442695, %v2881_v55  ;;  %v2863_v55 = vpack.c.bf16 %v1767_v54, %v1766_v60 }
 0x61f   :  { %v1891_v1 = vmul.f32 -1.442695, %v2882_v62  ;;  %v1770_v62 = vld [vmem:[%s3598_s5 + $0x70] sm:$0xff] }
 0x620   :  { %2959 = vpow2.f32 %v1890_v58  ;;  %v2866_v58 = vpack.c.bf16 %v1769_v44, %v1768_v39 }
 0x621   :  { %2961 = vpow2.f32 %v1891_v1  ;;  %v1771_v1 = vld [vmem:[%s3598_s5 + $0x78] sm:$0xff] }
 0x62a   :  { %v2960_v5 = vpop.eup %2959 }
 0x62b   :  { %v1395_v6 = vadd.f32 1.0, %v2960_v5  ;;  %v2962_v47 = vpop.eup %2961  ;;  %v2869_v5 = vpack.c.bf16 %v1771_v1, %v1770_v62 }
 0x62c   :  { %v1402_v7 = vadd.f32 1.0, %v2962_v47 }
 0x62d   :  { %2963 = vrcp.f32 %v1395_v6 }
 0x62e   :  { %2965 = vrcp.f32 %v1402_v7 }
 0x637   :  { %v2964_v11 = vpop.eup %2963 }
 0x638   :  { %v1406_v13 = vmul.f32 %v2964_v11, %v1405_v12  ;;  %v2966_v18 = vpop.eup %2965 }
 0x639   :  { %v1409_v20 = vsub.f32 1.0, %v2966_v18  ;;  %v1411_v50 = vmul.f32 %v2966_v18, %v1243_v52  ;;  %v2860_v52 = vpack.c.bf16 %v1765_v49, %v1764_v46 }
 0x63a   :  { %v1407_v17 = vadd.f32 %v1406_v13, %v3268_v57  ;;  %v1757_v57 = vld [vmem:[%s3598_s5 + $0x8] sm:$0xff] }
 0x63c   :  { %2967 = vtanh.f32 %v1407_v17 }
 0x646   :  { %v2968_v24 = vpop.eup %2967 }
 0x647   :  { %v1410_v25 = vmul.f32 %v2968_v24, %v1409_v20 }
 0x649   :  { %v1412_v27 = vadd.f32 %v1411_v50, %v1410_v25 }
 0x64b   :  { %1484 = vmatmul.mubr.f32.vlgmr.msra.gmra.mrb[12].mxu0 %v1412_v27  ;;  %2319 = vmatmul.mubr.f32.vlgmr.msra.gmra.mrb[20].mxu1 %v1412_v27 }
 0x64c   :  { %2794 = vmatpush1.bf16.msra.mxu0 %v3090_v15  ;;  %2825 = vmatpush3.bf16.msra.mxu1 %v3124_v40 }
 0x64d   :  { %2796 = vmatprep.subr.bf16.mxu0 %v3093_v16  ;;  %2826 = vmatprep.subr.bf16.mxu1 %v3017_v48 }
 0x64e   :  { %1652 = vmatprep.mubr.f32.mxu0 %v3016_v0  ;;  %2353 = vmatprep.mubr.msk.f32.mxu1 %vm3018_vm1, %v3016_v0 }
 0x650   :  { %2798 = vmatpush1.bf16.msra.mxu0 %v3101_v22  ;;  %2828 = vmatpush3.bf16.msra.mxu1 %v3140_v51 }
 0x651   :  { %2800 = vmatprep.subr.bf16.mxu0 %v3104_v23  ;;  %2829 = vmatprep.subr.bf16.mxu1 %v3017_v48 }
 0x654   :  { %2802 = vmatpush1.bf16.msra.mxu0 %v3118_v31  ;;  %2831 = vmatpush3.bf16.msra.mxu1 %v3156_v61 }
 0x655   :  { %2804 = vmatprep.subr.bf16.mxu0 %v3121_v33  ;;  %2832 = vmatprep.subr.bf16.mxu1 %v3017_v48 }
 0x658   :  { %2806 = vmatpush1.bf16.msra.mxu0 %v3131_v42  ;;  %2834 = vmatpush3.bf16.msra.mxu1 %v3172_v8 }
 0x659   :  { %2808 = vmatprep.subr.bf16.mxu0 %v3134_v45  ;;  %2835 = vmatprep.subr.bf16.mxu1 %v3017_v48 }
 0x65c   :  { %2810 = vmatpush1.bf16.msra.mxu0 %v3147_v53  ;;  %2837 = vmatpush3.bf16.msra.mxu1 %v3188_v19 }
 0x65d   :  { %2812 = vmatprep.subr.bf16.mxu0 %v3150_v56  ;;  %2838 = vmatprep.subr.bf16.mxu1 %v3017_v48 }
 0x660   :  { %2814 = vmatpush1.bf16.msra.mxu0 %v3163_v63  ;;  %2840 = vmatpush3.bf16.msra.mxu1 %v3202_v26 }
 0x661   :  { %2816 = vmatprep.subr.bf16.mxu0 %v3166_v3  ;;  %2841 = vmatprep.subr.bf16.mxu1 %v3017_v48 }
 0x664   :  { %2818 = vmatpush1.bf16.msra.mxu0 %v3179_v10  ;;  %2843 = vmatpush3.bf16.msra.mxu1 %v3212_v29 }
 0x665   :  { %2820 = vmatprep.subr.bf16.mxu0 %v3182_v14  ;;  %2844 = vmatprep.subr.bf16.mxu1 %v3017_v48 }
 0x668   :  { %2822 = vmatpush1.bf16.msra.mxu0 %v3195_v21  ;;  %2846 = vmatpush3.bf16.msra.mxu1 %v3221_v34  ;;  %v1756_v34 = vld [vmem:[%s3598_s5] sm:$0xff] }
 0x669   :  { %2847 = vmatprep.subr.bf16.mxu0 %v3017_v48 }
 0x71e   :  { %v1485_v15 = vpop.f32.mrb[12].mxu0  ;;  %v1556_v16 = vpop.f32.mrb[20].mxu1 }
 0x71f   :  { %v2883_v22 = vadd.f32 %v1485_v15, %v3270_v59  ;;  %v1487_v23 = vpop.f32.mrb[13].mxu0  ;;  %v2320_v31 = vpop.f32.mrb[21].mxu1  ;;  %v1574_v61 = vadd.f32 %v3285_v28, %v1556_v16 }
 0x720   :  { %v2884_v40 = vadd.f32 %v1487_v23, %v3274_v2 }
 0x721   :  { %v1892_v33 = vmul.f32 -1.442695, %v2883_v22 }
 0x722   :  { %v1893_v42 = vmul.f32 -1.442695, %v2884_v40  ;;  %v1896_v40 = vld [vmem:[%s3599_s6] ss:$0 sm:$0xff] }
 0x723   :  { %2969 = vpow2.f32 %v1892_v33 }
 0x724   :  { %2971 = vpow2.f32 %v1893_v42 }
 0x72d   :  { %v2970_v45 = vpop.eup %2969 }
 0x72e   :  { %v1564_v51 = vadd.f32 1.0, %v2970_v45  ;;  %v2972_v53 = vpop.eup %2971 }
 0x72f   :  { %v1571_v56 = vadd.f32 1.0, %v2972_v53 }
 0x730   :  { %2973 = vrcp.f32 %v1564_v51 }
 0x731   :  { %2975 = vrcp.f32 %v1571_v56 }
 0x73a   :  { %v2974_v63 = vpop.eup %2973 }
 0x73b   :  { %v1575_v3 = vmul.f32 %v2974_v63, %v1574_v61  ;;  %v2976_v10 = vpop.eup %2975 }
 0x73c   :  { %v1578_v14 = vsub.f32 1.0, %v2976_v10  ;;  %v1580_v26 = vmul.f32 %v2976_v10, %v1412_v27 }
 0x73d   :  { %v1576_v8 = vadd.f32 %v1575_v3, %v3279_v9  ;;  %v2848_v9 = vpack.c.bf16 %v1757_v57, %v1756_v34 }
 0x73f   :  { %2977 = vtanh.f32 %v1576_v8 }
 0x749   :  { %v2978_v19 = vpop.eup %2977 }
 0x74a   :  { %v1579_v21 = vmul.f32 %v2978_v19, %v1578_v14 }
 0x74c   :  { %v3521_v29 = vadd.f32 %v1580_v26, %v1579_v21 }
 0x74e   :  { %1653 = vmatmul.mubr.f32.vlgmr.msra.gmra.mrb[14].mxu0 %v3521_v29  ;;  %2354 = vmatmul.mubr.f32.vlgmr.msra.gmra.mrb[22].mxu1 %v3521_v29 }
 0x74f   :  { %2388 = vmatprep.mubr.msk.f32.mxu0 %vm3018_vm1, %v3016_v0  ;;  %2849 = vmatpush3.bf16.msra.mxu0 %v2848_v9  ;;  %v1759_v0 = vld [vmem:[%s3598_s5 + $0x18] sm:$0xff] }
 0x750   :  { %2850 = vmatprep.subr.bf16.mxu0 %v3017_v48  ;;  %v2851_v32 = vpack.c.bf16 %v1759_v0, %v1758_v30 }
 0x753   :  { %2852 = vmatpush3.bf16.msra.mxu0 %v2851_v32 }
 0x754   :  { %2853 = vmatprep.subr.bf16.mxu0 %v3017_v48 }
 0x757   :  { %2855 = vmatpush3.bf16.msra.mxu0 %v2854_v37 }
 0x758   :  { %2856 = vmatprep.subr.bf16.mxu0 %v3017_v48 }
 0x75b   :  { %2858 = vmatpush3.bf16.msra.mxu0 %v2857_v41 }
 0x75c   :  { %2859 = vmatprep.subr.bf16.mxu0 %v3017_v48 }
 0x75f   :  { %2861 = vmatpush3.bf16.msra.mxu0 %v2860_v52 }
 0x760   :  { %2862 = vmatprep.subr.bf16.mxu0 %v3017_v48 }
 0x763   :  { %2864 = vmatpush3.bf16.msra.mxu0 %v2863_v55 }
 0x764   :  { %2865 = vmatprep.subr.bf16.mxu0 %v3017_v48 }
 0x767   :  { %2867 = vmatpush3.bf16.msra.mxu0 %v2866_v58 }
 0x768   :  { %2868 = vmatprep.subr.bf16.mxu0 %v3017_v48 }
 0x76b   :  { %2870 = vmatpush3.bf16.msra.mxu0 %v2869_v5 }
 0x821   :  { %v1654_v6 = vpop.f32.mrb[14].mxu0  ;;  %v1725_v47 = vpop.f32.mrb[22].mxu1 }
 0x822   :  { %v2885_v7 = vadd.f32 %v1654_v6, %v3270_v59  ;;  %v1656_v12 = vpop.f32.mrb[15].mxu0  ;;  %v2355_v11 = vpop.f32.mrb[23].mxu1  ;;  %v1743_v48 = vadd.f32 %v3285_v28, %v1725_v47 }
 0x823   :  { %v2886_v17 = vadd.f32 %v1656_v12, %v3274_v2 }
 0x824   :  { %v1894_v13 = vmul.f32 -1.442695, %v2885_v7 }
 0x825   :  { %v1895_v18 = vmul.f32 -1.442695, %v2886_v17 }
 0x826   :  { %2979 = vpow2.f32 %v1894_v13 }
 0x827   :  { %2981 = vpow2.f32 %v1895_v18 }
 0x830   :  { %v2980_v20 = vpop.eup %2979 }
 0x831   :  { %v1733_v24 = vadd.f32 1.0, %v2980_v20  ;;  %v2982_v25 = vpop.eup %2981 }
 0x832   :  { %v1740_v50 = vadd.f32 1.0, %v2982_v25 }
 0x833   :  { %2983 = vrcp.f32 %v1733_v24 }
 0x834   :  { %2985 = vrcp.f32 %v1740_v50 }
 0x83d   :  { %v2984_v27 = vpop.eup %2983 }
 0x83e   :  { %v1744_v15 = vmul.f32 %v2984_v27, %v1743_v48  ;;  %v2986_v16 = vpop.eup %2985 }
 0x83f   :  { %v1747_v22 = vsub.f32 1.0, %v2986_v16  ;;  %v1749_v31 = vmul.f32 %v2986_v16, %v3521_v29 }
 0x840   :  { %v1745_v59 = vadd.f32 %v1744_v15, %v3276_v4 }
 0x842   :  { %2987 = vtanh.f32 %v1745_v59 }
 0x84c   :  { %v2988_v23 = vpop.eup %2987 }
 0x84d   :  { %v1748_v2 = vmul.f32 %v2988_v23, %v1747_v22 }
 0x84f   :  { %v1750_v33 = vadd.f32 %v1749_v31, %v1748_v2 }
 0x851   :  { %2389 = vmatmul.mubr.f32.vlgmr.msra.gmra.mrb[16].mxu0 %v1750_v33 }
 0x924   :  { %v1845_v42 = vpop.f32.mrb[16].mxu0 }
 0x925   :  { %v1846_v28 = vadd.f32 %v1896_v40, %v1845_v42  ;;  %v2390_v45 = vpop.f32.mrb[17].mxu0 }
 0x927   :  { %1850 = vst.msk [vmem:[%s3600_s7] sm:$0xff] %vm1849_vm2, %v1846_v28 }
 0x928   :  { %1855 = vsyncpa [#allocation5], 1 }

</bundles_post_ra>
